<compile_context>
chip_gen: v7x
topology: tpu7x:2x2x1
jax: 0.10.0
libtpu: 0.0.40
codegen_flags: <defaults>
</compile_context>

<pallas_src>
import numpy as np
import jax
import jax.numpy as jnp
from jax.experimental import pallas as pl
from jax.experimental.pallas import tpu as pltpu

# ----------------------------- static config -----------------------------
B = 2                          # batch size
L0 = 96                        # input length (example_duration * resample_fs)
K = 5                          # conv kernel size
C0, C1, C2, C3 = 1, 8, 8, 16   # channels: input, conv1, conv2, conv3
L1 = L0 // 3                   # 32 after MaxPool1d(3,3)
L2 = L1 // 4                   # 8  after AvgPool1d(4,4)
FC_IN = C3 * L2                # 128
FC_U = 32                      # fc_units
NCLS = 4                       # class_num
BN_EPS = 1e-5

SEG = 128                      # lanes reserved per example (128-aligned segments)
NLANE = B * SEG                # folded lane width of every activation

# ---------------- parameter slab layout: ONE packed (P_ROWS, 32) f32 input ----------------
R_W1 = 0                        # conv1: 5 taps x (8, 1)
R_W2 = R_W1 + K * C1            # 40   conv2: 5 taps x (8, 8)
R_W3 = R_W2 + K * C2            # 80   conv3: 5 taps x (16, 8)
R_WF = R_W3 + K * C3            # 160  fc1:   8 taps x (32, 16)
R_WO = R_WF + L2 * FC_U         # 416  out:   (4, 32)
R_B1 = ((R_WO + NCLS + 7) // 8) * 8     # 424  biases (BN-folded), column 0
R_B2 = R_B1 + C1                # 432
R_B3 = R_B2 + C2                # 440
R_BF = R_B3 + C3                # 456
R_BO = R_BF + FC_U              # 488
P_ROWS = ((R_BO + NCLS + 7) // 8) * 8   # 496
P_COLS = FC_U                   # 32

# ---------------- constant slab layout: (2*NLANE+1, NLANE) f32 ----------------
R_MAXSEL = 0                    # MaxPool1d(3,3) lane-selection matrix
R_AVGSEL = NLANE                # AvgPool1d(4,4) averaging-selection matrix
R_MASK = 2 * NLANE              # per-segment validity mask (lanes [0, L0))
C_ROWS = 2 * NLANE + 1


# ----------------------------- fused kernel -----------------------------
def _cnn_fused_kernel(x_ref, p_ref, c_ref, o_ref):
    """Full forward pass. Activations are batch-folded on the lane axis as
    (channels, B*SEG): each example owns a 128-lane segment with valid data in
    lanes [0, L) and zeros elsewhere (the zeros double as the 'same' padding)."""

    def conv_taps(x, row0, cout, cin, offsets):
        # 'same' conv as accumulated per-tap matmuls on lane-rolled activations:
        #   y[:, j] += W_k @ x[:, j + off_k]
        # Padding lanes of `x` are zero, so the circular roll never leaks data
        # into valid output lanes.
        acc = None
        for k, off in enumerate(offsets):
            xk = x if off == 0 else pltpu.roll(x, shift=(-off) % NLANE, axis=1)
            w = p_ref[row0 + k * cout: row0 + (k + 1) * cout, 0:cin]
            t = w * xk if cin == 1 else jnp.dot(w, xk, preferred_element_type=jnp.float32)
            acc = t if acc is None else acc + t
        return acc

    conv_offs = tuple(range(-(K // 2), K // 2 + 1))          # (-2, -1, 0, 1, 2)

    x = x_ref[...]                                           # (C0, NLANE)

    # block 1: Conv1d(1->8,k5,'same') + BN + ReLU (BN folded into weights/bias);
    # zero the per-segment padding lanes so block 2's rolls stay exact.
    y1 = conv_taps(x, R_W1, C1, C0, conv_offs) + p_ref[R_B1:R_B1 + C1, 0:1]
    y1 = jnp.maximum(y1, 0.0) * c_ref[R_MASK:R_MASK + 1, :]

    # block 2: Conv1d(8->8,k5,'same') + BN + ReLU + MaxPool1d(3,3)
    y2 = conv_taps(y1, R_W2, C2, C1, conv_offs) + p_ref[R_B2:R_B2 + C2, 0:1]
    y2 = jnp.maximum(y2, 0.0)
    m = jnp.maximum(y2, jnp.maximum(pltpu.roll(y2, shift=NLANE - 1, axis=1),
                                    pltpu.roll(y2, shift=NLANE - 2, axis=1)))
    y2 = jnp.dot(m, c_ref[R_MAXSEL:R_MAXSEL + NLANE, :],
                 preferred_element_type=jnp.float32)         # (C2, NLANE), L1 lanes/segment

    # block 3: Conv1d(8->16,k5,'same') + BN + ReLU, then AvgPool1d(4,4)
    y3 = conv_taps(y2, R_W3, C3, C2, conv_offs) + p_ref[R_B3:R_B3 + C3, 0:1]
    y3 = jnp.maximum(y3, 0.0)
    ya = jnp.dot(y3, c_ref[R_AVGSEL:R_AVGSEL + NLANE, :],
                 preferred_element_type=jnp.float32)         # (C3, NLANE), L2 lanes/segment

    # flatten + Linear(128->32) + BN + ReLU as an L2-tap "conv": column b*SEG of h
    # holds fc1(x_b) on the sublane axis, consuming PyTorch feature order c*L2+l
    # without any transpose / scratch round-trip.
    h = conv_taps(ya, R_WF, FC_U, C3, tuple(range(L2))) + p_ref[R_BF:R_BF + FC_U, 0:1]
    h = jnp.maximum(h, 0.0)                                  # (FC_U, NLANE)
    # TODO(synk): nn.Dropout skipped (inference-mode identity).

    # Linear(32->4), kept lane-dense in the transposed (class, lane) orientation;
    # only columns b*SEG are meaningful, the wrapper extracts them (8 floats).
    o_ref[...] = (jnp.dot(p_ref[R_WO:R_WO + NCLS, 0:FC_U], h,
                          preferred_element_type=jnp.float32)
                  + p_ref[R_BO:R_BO + NCLS, 0:1])            # (NCLS, NLANE)


_VMEM = pl.BlockSpec(memory_space=pltpu.MemorySpace.VMEM)


@jax.jit
def cnn_forward(x, params_slab, consts):
    """x: (B, 1, L0) -> logits (B, NCLS). One pallas_call, 3 input DMAs, 1 output."""
    assert x.shape == (B, C0, L0) and C0 == 1
    # Fold the batch onto the lane axis, one 128-lane segment per example.
    xp = jnp.pad(x[:, 0, :], ((0, 0), (0, SEG - L0))).reshape(C0, NLANE)
    out_t = pl.pallas_call(
        _cnn_fused_kernel,
        out_shape=jax.ShapeDtypeStruct((NCLS, NLANE), jnp.float32),
        in_specs=[_VMEM, _VMEM, _VMEM],
        out_specs=_VMEM,
        # NOTE(scaling): for large B, add grid=(B//TB,) with a BlockSpec over the folded
        # lane axis and dimension_semantics=("parallel",) (shards across v7x's two TCs),
        # switch the pooling matrices to per-segment (SEG, SEG) blocks (B-invariant size,
        # the (NLANE, NLANE) ones here grow as B^2), and set
        # pltpu.CompilerParams(vmem_limit_bytes=...) against the per-generation VMEM.
    )(xp, params_slab, consts)
    return out_t[:, ::SEG].T                                 # (B, NCLS)


# ----------------------------- host-side packing -----------------------------
def init_raw_params(key):
    """Synthetic parameters in native PyTorch layouts: Conv1d (Cout,Cin,K), Linear (out,in),
    BatchNorm gamma/beta/running_mean/running_var."""
    ks = iter(jax.random.split(key, 32))

    def nrm(shape, scale=0.1):
        return scale * jax.random.normal(next(ks), shape, jnp.float32)

    def pos(shape):                       # strictly positive (BN gamma / running var)
        return 0.5 + jax.random.uniform(next(ks), shape, dtype=jnp.float32)

    raw = {}
    for name, (cout, cin) in (('1', (C1, C0)), ('2', (C2, C1)), ('3', (C3, C2))):
        raw['W' + name] = nrm((cout, cin, K), 0.2)
        raw['b' + name] = nrm((cout,))
        raw['g' + name] = pos((cout,))
        raw['be' + name] = nrm((cout,))
        raw['m' + name] = nrm((cout,))
        raw['v' + name] = pos((cout,))
    raw['Wf'] = nrm((FC_U, FC_IN)); raw['bfc'] = nrm((FC_U,))
    raw['gf'] = pos((FC_U,)); raw['bef'] = nrm((FC_U,))
    raw['mf'] = nrm((FC_U,)); raw['vf'] = pos((FC_U,))
    raw['Wo'] = nrm((NCLS, FC_U)); raw['bo'] = nrm((NCLS,))
    return raw


def pack_params(raw):
    """Fold BatchNorm (inference) into conv/FC weights+bias and pack everything into
    ONE contiguous (P_ROWS, 32) f32 slab (single DMA, static in-kernel slices)."""
    p = np.zeros((P_ROWS, P_COLS), np.float32)

    def fold(gamma, beta, mean, var):
        s = np.asarray(gamma) / np.sqrt(np.asarray(var) + BN_EPS)
        return s, np.asarray(beta) - s * np.asarray(mean)

    for name, r_w, r_b, cout, cin in (('1', R_W1, R_B1, C1, C0),
                                      ('2', R_W2, R_B2, C2, C1),
                                      ('3', R_W3, R_B3, C3, C2)):
        s, t = fold(raw['g' + name], raw['be' + name], raw['m' + name], raw['v' + name])
        w = np.asarray(raw['W' + name]) * s[:, None, None]        # (cout, cin, K)
        for k in range(K):
            p[r_w + k * cout: r_w + (k + 1) * cout, 0:cin] = w[:, :, k]
        p[r_b:r_b + cout, 0] = s * np.asarray(raw['b' + name]) + t

    s, t = fold(raw['gf'], raw['bef'], raw['mf'], raw['vf'])
    wf = (np.asarray(raw['Wf']) * s[:, None]).reshape(FC_U, C3, L2)   # [u, c, l]; feature=c*L2+l
    for l in range(L2):
        p[R_WF + l * FC_U: R_WF + (l + 1) * FC_U, 0:C3] = wf[:, :, l]
    p[R_BF:R_BF + FC_U, 0] = s * np.asarray(raw['bfc']) + t

    p[R_WO:R_WO + NCLS, 0:FC_U] = np.asarray(raw['Wo'])
    p[R_BO:R_BO + NCLS, 0] = np.asarray(raw['bo'])
    return jnp.asarray(p)


def build_consts():
    """Compile-time constants: block-diagonal MaxPool/AvgPool lane-selection matrices and
    the per-segment valid-lane mask (precomputed host-side, one DMA)."""
    c = np.zeros((C_ROWS, NLANE), np.float32)
    for b in range(B):
        o = b * SEG
        for t in range(L1):                     # MaxPool1d(3,3): pick windowed max at lane 3t
            c[R_MAXSEL + o + 3 * t, o + t] = 1.0
        for t in range(L2):                     # AvgPool1d(4,4): average lanes 4t..4t+3
            for r in range(4):
                c[R_AVGSEL + o + 4 * t + r, o + t] = 0.25
        c[R_MASK, o:o + L0] = 1.0               # valid lanes of a length-L0 activation
    return jnp.asarray(c)


# ----------------------------- pure-JAX reference -----------------------------
def reference_forward(x, raw):
    """Straightforward JAX port of the PyTorch module in eval mode (for self-check)."""
    prec = jax.lax.Precision.HIGHEST

    def conv_same(h, w):                        # h (B,Cin,L), w (Cout,Cin,K) -> (B,Cout,L)
        n = h.shape[-1]
        hp = jnp.pad(h, ((0, 0), (0, 0), (K // 2, K // 2)))
        return sum(jnp.einsum('oc,bcl->bol', w[:, :, k], hp[:, :, k:k + n], precision=prec)
                   for k in range(K))

    def bn(h, g, be, mu, var):
        s = g / jnp.sqrt(var + BN_EPS)
        if h.ndim == 3:
            return s[None, :, None] * (h - mu[None, :, None]) + be[None, :, None]
        return s[None, :] * (h - mu[None, :]) + be[None, :]

    h = jnp.maximum(bn(conv_same(x, raw['W1']) + raw['b1'][None, :, None],
                       raw['g1'], raw['be1'], raw['m1'], raw['v1']), 0.0)
    h = jnp.maximum(bn(conv_same(h, raw['W2']) + raw['b2'][None, :, None],
                       raw['g2'], raw['be2'], raw['m2'], raw['v2']), 0.0)
    h = jnp.max(h.reshape(B, C2, L1, 3), axis=-1)                       # MaxPool1d(3,3)
    h = jnp.maximum(bn(conv_same(h, raw['W3']) + raw['b3'][None, :, None],
                       raw['g3'], raw['be3'], raw['m3'], raw['v3']), 0.0)
    h = jnp.mean(h.reshape(B, C3, L2, 4), axis=-1)                      # AvgPool1d(4,4)
    h = h.reshape(B, FC_IN)                                             # view(-1, C3*L2)
    h = jnp.dot(h, raw['Wf'].T, precision=prec) + raw['bfc'][None, :]
    h = jnp.maximum(bn(h, raw['gf'], raw['bef'], raw['mf'], raw['vf']), 0.0)
    return jnp.dot(h, raw['Wo'].T, precision=prec) + raw['bo'][None, :]


# ----------------------------- main -----------------------------
if __name__ == "__main__":
    key = jax.random.PRNGKey(0)
    kx, kp = jax.random.split(key)
    x = jax.random.normal(kx, (B, C0, L0), jnp.float32)   # (batch, channels=1, length=96)

    raw = init_raw_params(kp)
    params_slab = pack_params(raw)
    consts = build_consts()

    out = jax.block_until_ready(cnn_forward(x, params_slab, consts))
    assert out.shape == (B, NCLS), out.shape
    assert bool(jnp.all(jnp.isfinite(out)))

    # Self-check against the pure-JAX reference (tolerance absorbs MXU f32 multi-pass
    # accumulation-order differences; a structural bug would be orders larger).
    ref = jax.block_until_ready(reference_forward(x, raw))
    np.testing.assert_allclose(np.asarray(out), np.asarray(ref), rtol=1e-2, atol=1e-2)

    print("KERNEL_OK")
</pallas_src>

<mosaic_0001>
module attributes {stable_mosaic.version = 11 : i64} {
  func.func @_cnn_fused_kernel(%arg0: memref<1x256xf32, #tpu.memory_space<vmem>>, %arg1: memref<496x32xf32, #tpu.memory_space<vmem>>, %arg2: memref<513x256xf32, #tpu.memory_space<vmem>>, %arg3: memref<4x256xf32, #tpu.memory_space<vmem>>) attributes {dimension_semantics = [], scalar_prefetch = 0 : i64, scratch_operands = 0 : i64, tpu.core_type = #tpu.core_type<tc>} {
    %c0 = arith.constant 0 : index
    %c0_0 = arith.constant 0 : index
    %0 = vector.load %arg0[%c0, %c0_0] : memref<1x256xf32, #tpu.memory_space<vmem>>, vector<1x256xf32>
    %c2_i32 = arith.constant 2 : i32
    %1 = tpu.dynamic_rotate %0 by %c2_i32 dim 1 : vector<1x256xf32>, i32 -> vector<1x256xf32>
    %c0_1 = arith.constant 0 : index
    %c0_2 = arith.constant 0 : index
    %2 = vector.load %arg1[%c0_1, %c0_2] : memref<496x32xf32, #tpu.memory_space<vmem>>, vector<8x1xf32>
    %3 = vector.broadcast %2 : vector<8x1xf32> to vector<8x256xf32>
    %4 = vector.broadcast %1 : vector<1x256xf32> to vector<8x256xf32>
    %5 = arith.mulf %3, %4 : vector<8x256xf32>
    %c1_i32 = arith.constant 1 : i32
    %6 = tpu.dynamic_rotate %0 by %c1_i32 dim 1 : vector<1x256xf32>, i32 -> vector<1x256xf32>
    %c8 = arith.constant 8 : index
    %c0_3 = arith.constant 0 : index
    %7 = vector.load %arg1[%c8, %c0_3] : memref<496x32xf32, #tpu.memory_space<vmem>>, vector<8x1xf32>
    %8 = vector.broadcast %7 : vector<8x1xf32> to vector<8x256xf32>
    %9 = vector.broadcast %6 : vector<1x256xf32> to vector<8x256xf32>
    %10 = arith.mulf %8, %9 : vector<8x256xf32>
    %11 = arith.addf %5, %10 : vector<8x256xf32>
    %c16 = arith.constant 16 : index
    %c0_4 = arith.constant 0 : index
    %12 = vector.load %arg1[%c16, %c0_4] : memref<496x32xf32, #tpu.memory_space<vmem>>, vector<8x1xf32>
    %13 = vector.broadcast %12 : vector<8x1xf32> to vector<8x256xf32>
    %14 = vector.broadcast %0 : vector<1x256xf32> to vector<8x256xf32>
    %15 = arith.mulf %13, %14 : vector<8x256xf32>
    %16 = arith.addf %11, %15 : vector<8x256xf32>
    %c255_i32 = arith.constant 255 : i32
    %17 = tpu.dynamic_rotate %0 by %c255_i32 dim 1 : vector<1x256xf32>, i32 -> vector<1x256xf32>
    %c24 = arith.constant 24 : index
    %c0_5 = arith.constant 0 : index
    %18 = vector.load %arg1[%c24, %c0_5] : memref<496x32xf32, #tpu.memory_space<vmem>>, vector<8x1xf32>
    %19 = vector.broadcast %18 : vector<8x1xf32> to vector<8x256xf32>
    %20 = vector.broadcast %17 : vector<1x256xf32> to vector<8x256xf32>
    %21 = arith.mulf %19, %20 : vector<8x256xf32>
    %22 = arith.addf %16, %21 : vector<8x256xf32>
    %c254_i32 = arith.constant 254 : i32
    %23 = tpu.dynamic_rotate %0 by %c254_i32 dim 1 : vector<1x256xf32>, i32 -> vector<1x256xf32>
    %c32 = arith.constant 32 : index
    %c0_6 = arith.constant 0 : index
    %24 = vector.load %arg1[%c32, %c0_6] : memref<496x32xf32, #tpu.memory_space<vmem>>, vector<8x1xf32>
    %25 = vector.broadcast %24 : vector<8x1xf32> to vector<8x256xf32>
    %26 = vector.broadcast %23 : vector<1x256xf32> to vector<8x256xf32>
    %27 = arith.mulf %25, %26 : vector<8x256xf32>
    %28 = arith.addf %22, %27 : vector<8x256xf32>
    %c424 = arith.constant 424 : index
    %c0_7 = arith.constant 0 : index
    %29 = vector.load %arg1[%c424, %c0_7] : memref<496x32xf32, #tpu.memory_space<vmem>>, vector<8x1xf32>
    %30 = vector.broadcast %29 : vector<8x1xf32> to vector<8x256xf32>
    %31 = arith.addf %28, %30 : vector<8x256xf32>
    %cst = arith.constant 0.000000e+00 : f32
    %32 = vector.broadcast %cst : f32 to vector<8x256xf32>
    %33 = arith.maximumf %31, %32 : vector<8x256xf32>
    %c512 = arith.constant 512 : index
    %c0_8 = arith.constant 0 : index
    %34 = vector.load %arg2[%c512, %c0_8] : memref<513x256xf32, #tpu.memory_space<vmem>>, vector<1x256xf32>
    %35 = vector.broadcast %34 : vector<1x256xf32> to vector<8x256xf32>
    %36 = arith.mulf %33, %35 : vector<8x256xf32>
    %c2_i32_9 = arith.constant 2 : i32
    %37 = tpu.dynamic_rotate %36 by %c2_i32_9 dim 1 : vector<8x256xf32>, i32 -> vector<8x256xf32>
    %c40 = arith.constant 40 : index
    %c0_10 = arith.constant 0 : index
    %38 = vector.load %arg1[%c40, %c0_10] : memref<496x32xf32, #tpu.memory_space<vmem>>, vector<8x8xf32>
    %cst_11 = arith.constant dense<0.000000e+00> : vector<8x256xf32>
    %39 = tpu.matmul %38, %37, %cst_11 {dimension_numbers = #tpu.dot_dimension_numbers<[1], [0], [0], [1], [0, 0, 1, 1], [], []>} : vector<8x8xf32>, vector<8x256xf32>, vector<8x256xf32> -> vector<8x256xf32>
    %c1_i32_12 = arith.constant 1 : i32
    %40 = tpu.dynamic_rotate %36 by %c1_i32_12 dim 1 : vector<8x256xf32>, i32 -> vector<8x256xf32>
    %c48 = arith.constant 48 : index
    %c0_13 = arith.constant 0 : index
    %41 = vector.load %arg1[%c48, %c0_13] : memref<496x32xf32, #tpu.memory_space<vmem>>, vector<8x8xf32>
    %cst_14 = arith.constant dense<0.000000e+00> : vector<8x256xf32>
    %42 = tpu.matmul %41, %40, %cst_14 {dimension_numbers = #tpu.dot_dimension_numbers<[1], [0], [0], [1], [0, 0, 1, 1], [], []>} : vector<8x8xf32>, vector<8x256xf32>, vector<8x256xf32> -> vector<8x256xf32>
    %43 = arith.addf %39, %42 : vector<8x256xf32>
    %c56 = arith.constant 56 : index
    %c0_15 = arith.constant 0 : index
    %44 = vector.load %arg1[%c56, %c0_15] : memref<496x32xf32, #tpu.memory_space<vmem>>, vector<8x8xf32>
    %cst_16 = arith.constant dense<0.000000e+00> : vector<8x256xf32>
    %45 = tpu.matmul %44, %36, %cst_16 {dimension_numbers = #tpu.dot_dimension_numbers<[1], [0], [0], [1], [0, 0, 1, 1], [], []>} : vector<8x8xf32>, vector<8x256xf32>, vector<8x256xf32> -> vector<8x256xf32>
    %46 = arith.addf %43, %45 : vector<8x256xf32>
    %c255_i32_17 = arith.constant 255 : i32
    %47 = tpu.dynamic_rotate %36 by %c255_i32_17 dim 1 : vector<8x256xf32>, i32 -> vector<8x256xf32>
    %c64 = arith.constant 64 : index
    %c0_18 = arith.constant 0 : index
    %48 = vector.load %arg1[%c64, %c0_18] : memref<496x32xf32, #tpu.memory_space<vmem>>, vector<8x8xf32>
    %cst_19 = arith.constant dense<0.000000e+00> : vector<8x256xf32>
    %49 = tpu.matmul %48, %47, %cst_19 {dimension_numbers = #tpu.dot_dimension_numbers<[1], [0], [0], [1], [0, 0, 1, 1], [], []>} : vector<8x8xf32>, vector<8x256xf32>, vector<8x256xf32> -> vector<8x256xf32>
    %50 = arith.addf %46, %49 : vector<8x256xf32>
    %c254_i32_20 = arith.constant 254 : i32
    %51 = tpu.dynamic_rotate %36 by %c254_i32_20 dim 1 : vector<8x256xf32>, i32 -> vector<8x256xf32>
    %c72 = arith.constant 72 : index
    %c0_21 = arith.constant 0 : index
    %52 = vector.load %arg1[%c72, %c0_21] : memref<496x32xf32, #tpu.memory_space<vmem>>, vector<8x8xf32>
    %cst_22 = arith.constant dense<0.000000e+00> : vector<8x256xf32>
    %53 = tpu.matmul %52, %51, %cst_22 {dimension_numbers = #tpu.dot_dimension_numbers<[1], [0], [0], [1], [0, 0, 1, 1], [], []>} : vector<8x8xf32>, vector<8x256xf32>, vector<8x256xf32> -> vector<8x256xf32>
    %54 = arith.addf %50, %53 : vector<8x256xf32>
    %c432 = arith.constant 432 : index
    %c0_23 = arith.constant 0 : index
    %55 = vector.load %arg1[%c432, %c0_23] : memref<496x32xf32, #tpu.memory_space<vmem>>, vector<8x1xf32>
    %56 = vector.broadcast %55 : vector<8x1xf32> to vector<8x256xf32>
    %57 = arith.addf %54, %56 : vector<8x256xf32>
    %cst_24 = arith.constant 0.000000e+00 : f32
    %58 = vector.broadcast %cst_24 : f32 to vector<8x256xf32>
    %59 = arith.maximumf %57, %58 : vector<8x256xf32>
    %c255_i32_25 = arith.constant 255 : i32
    %60 = tpu.dynamic_rotate %59 by %c255_i32_25 dim 1 : vector<8x256xf32>, i32 -> vector<8x256xf32>
    %c254_i32_26 = arith.constant 254 : i32
    %61 = tpu.dynamic_rotate %59 by %c254_i32_26 dim 1 : vector<8x256xf32>, i32 -> vector<8x256xf32>
    %62 = arith.maximumf %60, %61 : vector<8x256xf32>
    %63 = arith.maximumf %59, %62 : vector<8x256xf32>
    %c0_27 = arith.constant 0 : index
    %c0_28 = arith.constant 0 : index
    %64 = vector.load %arg2[%c0_27, %c0_28] : memref<513x256xf32, #tpu.memory_space<vmem>>, vector<256x256xf32>
    %cst_29 = arith.constant dense<0.000000e+00> : vector<8x256xf32>
    %65 = tpu.matmul %63, %64, %cst_29 {dimension_numbers = #tpu.dot_dimension_numbers<[1], [0], [0], [1], [0, 0, 1, 1], [], []>} : vector<8x256xf32>, vector<256x256xf32>, vector<8x256xf32> -> vector<8x256xf32>
    %c2_i32_30 = arith.constant 2 : i32
    %66 = tpu.dynamic_rotate %65 by %c2_i32_30 dim 1 : vector<8x256xf32>, i32 -> vector<8x256xf32>
    %c80 = arith.constant 80 : index
    %c0_31 = arith.constant 0 : index
    %67 = vector.load %arg1[%c80, %c0_31] : memref<496x32xf32, #tpu.memory_space<vmem>>, vector<16x8xf32>
    %cst_32 = arith.constant dense<0.000000e+00> : vector<16x256xf32>
    %68 = tpu.matmul %67, %66, %cst_32 {dimension_numbers = #tpu.dot_dimension_numbers<[1], [0], [0], [1], [0, 0, 1, 1], [], []>} : vector<16x8xf32>, vector<8x256xf32>, vector<16x256xf32> -> vector<16x256xf32>
    %c1_i32_33 = arith.constant 1 : i32
    %69 = tpu.dynamic_rotate %65 by %c1_i32_33 dim 1 : vector<8x256xf32>, i32 -> vector<8x256xf32>
    %c96 = arith.constant 96 : index
    %c0_34 = arith.constant 0 : index
    %70 = vector.load %arg1[%c96, %c0_34] : memref<496x32xf32, #tpu.memory_space<vmem>>, vector<16x8xf32>
    %cst_35 = arith.constant dense<0.000000e+00> : vector<16x256xf32>
    %71 = tpu.matmul %70, %69, %cst_35 {dimension_numbers = #tpu.dot_dimension_numbers<[1], [0], [0], [1], [0, 0, 1, 1], [], []>} : vector<16x8xf32>, vector<8x256xf32>, vector<16x256xf32> -> vector<16x256xf32>
    %72 = arith.addf %68, %71 : vector<16x256xf32>
    %c112 = arith.constant 112 : index
    %c0_36 = arith.constant 0 : index
    %73 = vector.load %arg1[%c112, %c0_36] : memref<496x32xf32, #tpu.memory_space<vmem>>, vector<16x8xf32>
    %cst_37 = arith.constant dense<0.000000e+00> : vector<16x256xf32>
    %74 = tpu.matmul %73, %65, %cst_37 {dimension_numbers = #tpu.dot_dimension_numbers<[1], [0], [0], [1], [0, 0, 1, 1], [], []>} : vector<16x8xf32>, vector<8x256xf32>, vector<16x256xf32> -> vector<16x256xf32>
    %75 = arith.addf %72, %74 : vector<16x256xf32>
    %c255_i32_38 = arith.constant 255 : i32
    %76 = tpu.dynamic_rotate %65 by %c255_i32_38 dim 1 : vector<8x256xf32>, i32 -> vector<8x256xf32>
    %c128 = arith.constant 128 : index
    %c0_39 = arith.constant 0 : index
    %77 = vector.load %arg1[%c128, %c0_39] : memref<496x32xf32, #tpu.memory_space<vmem>>, vector<16x8xf32>
    %cst_40 = arith.constant dense<0.000000e+00> : vector<16x256xf32>
    %78 = tpu.matmul %77, %76, %cst_40 {dimension_numbers = #tpu.dot_dimension_numbers<[1], [0], [0], [1], [0, 0, 1, 1], [], []>} : vector<16x8xf32>, vector<8x256xf32>, vector<16x256xf32> -> vector<16x256xf32>
    %79 = arith.addf %75, %78 : vector<16x256xf32>
    %c254_i32_41 = arith.constant 254 : i32
    %80 = tpu.dynamic_rotate %65 by %c254_i32_41 dim 1 : vector<8x256xf32>, i32 -> vector<8x256xf32>
    %c144 = arith.constant 144 : index
    %c0_42 = arith.constant 0 : index
    %81 = vector.load %arg1[%c144, %c0_42] : memref<496x32xf32, #tpu.memory_space<vmem>>, vector<16x8xf32>
    %cst_43 = arith.constant dense<0.000000e+00> : vector<16x256xf32>
    %82 = tpu.matmul %81, %80, %cst_43 {dimension_numbers = #tpu.dot_dimension_numbers<[1], [0], [0], [1], [0, 0, 1, 1], [], []>} : vector<16x8xf32>, vector<8x256xf32>, vector<16x256xf32> -> vector<16x256xf32>
    %83 = arith.addf %79, %82 : vector<16x256xf32>
    %c440 = arith.constant 440 : index
    %c0_44 = arith.constant 0 : index
    %84 = vector.load %arg1[%c440, %c0_44] : memref<496x32xf32, #tpu.memory_space<vmem>>, vector<16x1xf32>
    %85 = vector.broadcast %84 : vector<16x1xf32> to vector<16x256xf32>
    %86 = arith.addf %83, %85 : vector<16x256xf32>
    %cst_45 = arith.constant 0.000000e+00 : f32
    %87 = vector.broadcast %cst_45 : f32 to vector<16x256xf32>
    %88 = arith.maximumf %86, %87 : vector<16x256xf32>
    %c256 = arith.constant 256 : index
    %c0_46 = arith.constant 0 : index
    %89 = vector.load %arg2[%c256, %c0_46] : memref<513x256xf32, #tpu.memory_space<vmem>>, vector<256x256xf32>
    %cst_47 = arith.constant dense<0.000000e+00> : vector<16x256xf32>
    %90 = tpu.matmul %88, %89, %cst_47 {dimension_numbers = #tpu.dot_dimension_numbers<[1], [0], [0], [1], [0, 0, 1, 1], [], []>} : vector<16x256xf32>, vector<256x256xf32>, vector<16x256xf32> -> vector<16x256xf32>
    %c160 = arith.constant 160 : index
    %c0_48 = arith.constant 0 : index
    %91 = vector.load %arg1[%c160, %c0_48] : memref<496x32xf32, #tpu.memory_space<vmem>>, vector<32x16xf32>
    %cst_49 = arith.constant dense<0.000000e+00> : vector<32x256xf32>
    %92 = tpu.matmul %91, %90, %cst_49 {dimension_numbers = #tpu.dot_dimension_numbers<[1], [0], [0], [1], [0, 0, 1, 1], [], []>} : vector<32x16xf32>, vector<16x256xf32>, vector<32x256xf32> -> vector<32x256xf32>
    %c255_i32_50 = arith.constant 255 : i32
    %93 = tpu.dynamic_rotate %90 by %c255_i32_50 dim 1 : vector<16x256xf32>, i32 -> vector<16x256xf32>
    %c192 = arith.constant 192 : index
    %c0_51 = arith.constant 0 : index
    %94 = vector.load %arg1[%c192, %c0_51] : memref<496x32xf32, #tpu.memory_space<vmem>>, vector<32x16xf32>
    %cst_52 = arith.constant dense<0.000000e+00> : vector<32x256xf32>
    %95 = tpu.matmul %94, %93, %cst_52 {dimension_numbers = #tpu.dot_dimension_numbers<[1], [0], [0], [1], [0, 0, 1, 1], [], []>} : vector<32x16xf32>, vector<16x256xf32>, vector<32x256xf32> -> vector<32x256xf32>
    %96 = arith.addf %92, %95 : vector<32x256xf32>
    %c254_i32_53 = arith.constant 254 : i32
    %97 = tpu.dynamic_rotate %90 by %c254_i32_53 dim 1 : vector<16x256xf32>, i32 -> vector<16x256xf32>
    %c224 = arith.constant 224 : index
    %c0_54 = arith.constant 0 : index
    %98 = vector.load %arg1[%c224, %c0_54] : memref<496x32xf32, #tpu.memory_space<vmem>>, vector<32x16xf32>
    %cst_55 = arith.constant dense<0.000000e+00> : vector<32x256xf32>
    %99 = tpu.matmul %98, %97, %cst_55 {dimension_numbers = #tpu.dot_dimension_numbers<[1], [0], [0], [1], [0, 0, 1, 1], [], []>} : vector<32x16xf32>, vector<16x256xf32>, vector<32x256xf32> -> vector<32x256xf32>
    %100 = arith.addf %96, %99 : vector<32x256xf32>
    %c253_i32 = arith.constant 253 : i32
    %101 = tpu.dynamic_rotate %90 by %c253_i32 dim 1 : vector<16x256xf32>, i32 -> vector<16x256xf32>
    %c256_56 = arith.constant 256 : index
    %c0_57 = arith.constant 0 : index
    %102 = vector.load %arg1[%c256_56, %c0_57] : memref<496x32xf32, #tpu.memory_space<vmem>>, vector<32x16xf32>
    %cst_58 = arith.constant dense<0.000000e+00> : vector<32x256xf32>
    %103 = tpu.matmul %102, %101, %cst_58 {dimension_numbers = #tpu.dot_dimension_numbers<[1], [0], [0], [1], [0, 0, 1, 1], [], []>} : vector<32x16xf32>, vector<16x256xf32>, vector<32x256xf32> -> vector<32x256xf32>
    %104 = arith.addf %100, %103 : vector<32x256xf32>
    %c252_i32 = arith.constant 252 : i32
    %105 = tpu.dynamic_rotate %90 by %c252_i32 dim 1 : vector<16x256xf32>, i32 -> vector<16x256xf32>
    %c288 = arith.constant 288 : index
    %c0_59 = arith.constant 0 : index
    %106 = vector.load %arg1[%c288, %c0_59] : memref<496x32xf32, #tpu.memory_space<vmem>>, vector<32x16xf32>
    %cst_60 = arith.constant dense<0.000000e+00> : vector<32x256xf32>
    %107 = tpu.matmul %106, %105, %cst_60 {dimension_numbers = #tpu.dot_dimension_numbers<[1], [0], [0], [1], [0, 0, 1, 1], [], []>} : vector<32x16xf32>, vector<16x256xf32>, vector<32x256xf32> -> vector<32x256xf32>
    %108 = arith.addf %104, %107 : vector<32x256xf32>
    %c251_i32 = arith.constant 251 : i32
    %109 = tpu.dynamic_rotate %90 by %c251_i32 dim 1 : vector<16x256xf32>, i32 -> vector<16x256xf32>
    %c320 = arith.constant 320 : index
    %c0_61 = arith.constant 0 : index
    %110 = vector.load %arg1[%c320, %c0_61] : memref<496x32xf32, #tpu.memory_space<vmem>>, vector<32x16xf32>
    %cst_62 = arith.constant dense<0.000000e+00> : vector<32x256xf32>
    %111 = tpu.matmul %110, %109, %cst_62 {dimension_numbers = #tpu.dot_dimension_numbers<[1], [0], [0], [1], [0, 0, 1, 1], [], []>} : vector<32x16xf32>, vector<16x256xf32>, vector<32x256xf32> -> vector<32x256xf32>
    %112 = arith.addf %108, %111 : vector<32x256xf32>
    %c250_i32 = arith.constant 250 : i32
    %113 = tpu.dynamic_rotate %90 by %c250_i32 dim 1 : vector<16x256xf32>, i32 -> vector<16x256xf32>
    %c352 = arith.constant 352 : index
    %c0_63 = arith.constant 0 : index
    %114 = vector.load %arg1[%c352, %c0_63] : memref<496x32xf32, #tpu.memory_space<vmem>>, vector<32x16xf32>
    %cst_64 = arith.constant dense<0.000000e+00> : vector<32x256xf32>
    %115 = tpu.matmul %114, %113, %cst_64 {dimension_numbers = #tpu.dot_dimension_numbers<[1], [0], [0], [1], [0, 0, 1, 1], [], []>} : vector<32x16xf32>, vector<16x256xf32>, vector<32x256xf32> -> vector<32x256xf32>
    %116 = arith.addf %112, %115 : vector<32x256xf32>
    %c249_i32 = arith.constant 249 : i32
    %117 = tpu.dynamic_rotate %90 by %c249_i32 dim 1 : vector<16x256xf32>, i32 -> vector<16x256xf32>
    %c384 = arith.constant 384 : index
    %c0_65 = arith.constant 0 : index
    %118 = vector.load %arg1[%c384, %c0_65] : memref<496x32xf32, #tpu.memory_space<vmem>>, vector<32x16xf32>
    %cst_66 = arith.constant dense<0.000000e+00> : vector<32x256xf32>
    %119 = tpu.matmul %118, %117, %cst_66 {dimension_numbers = #tpu.dot_dimension_numbers<[1], [0], [0], [1], [0, 0, 1, 1], [], []>} : vector<32x16xf32>, vector<16x256xf32>, vector<32x256xf32> -> vector<32x256xf32>
    %120 = arith.addf %116, %119 : vector<32x256xf32>
    %c456 = arith.constant 456 : index
    %c0_67 = arith.constant 0 : index
    %121 = vector.load %arg1[%c456, %c0_67] : memref<496x32xf32, #tpu.memory_space<vmem>>, vector<32x1xf32>
    %122 = vector.broadcast %121 : vector<32x1xf32> to vector<32x256xf32>
    %123 = arith.addf %120, %122 : vector<32x256xf32>
    %cst_68 = arith.constant 0.000000e+00 : f32
    %124 = vector.broadcast %cst_68 : f32 to vector<32x256xf32>
    %125 = arith.maximumf %123, %124 : vector<32x256xf32>
    %c416 = arith.constant 416 : index
    %c0_69 = arith.constant 0 : index
    %126 = vector.load %arg1[%c416, %c0_69] : memref<496x32xf32, #tpu.memory_space<vmem>>, vector<4x32xf32>
    %cst_70 = arith.constant dense<0.000000e+00> : vector<4x256xf32>
    %127 = tpu.matmul %126, %125, %cst_70 {dimension_numbers = #tpu.dot_dimension_numbers<[1], [0], [0], [1], [0, 0, 1, 1], [], []>} : vector<4x32xf32>, vector<32x256xf32>, vector<4x256xf32> -> vector<4x256xf32>
    %c488 = arith.constant 488 : index
    %c0_71 = arith.constant 0 : index
    %128 = vector.load %arg1[%c488, %c0_71] : memref<496x32xf32, #tpu.memory_space<vmem>>, vector<4x1xf32>
    %129 = vector.broadcast %128 : vector<4x1xf32> to vector<4x256xf32>
    %130 = arith.addf %127, %129 : vector<4x256xf32>
    %c0_72 = arith.constant 0 : index
    %c0_73 = arith.constant 0 : index
    %131 = vector.load %arg3[%c0_72, %c0_73] : memref<4x256xf32, #tpu.memory_space<vmem>>, vector<4x256xf32>
    tpu.vector_store %arg3[%c0_72, %c0_73], %130 {strides = array<i32>} : memref<4x256xf32, #tpu.memory_space<vmem>>, vector<4x256xf32>,
    return
  }
}

</mosaic_0001>

<bundles_post_ra>
// kernel: cnn_forward.1
= control target key start
LH: loop header
LB: loop body
LE: loop exit
PB: predicated region body
PF: predicated region fallthrough
CT: control target
= control target key end

     0   :  { %8 = vsyncpa [#allocation3], 0  ;;  %s2890_s12 = smov [#allocation2]   ;;  %s3426_s0 = inlined_call_operand.vmem [shape: f32[1,256], index: 0, kind: input, shape index: {}]   ;;  %s3427_s1 = inlined_call_operand.vmem [shape: f32[496,32], index: 1, kind: input, shape index: {}]   ;;  %s3428_s2 = inlined_call_operand.hbm [shape: f32[513,256], index: 2, kind: input, shape index: {}]   ;;  %s3429_s3 = inlined_call_operand.vmem [shape: f32[4,256], index: 3, kind: output, shape index: {}]  }
   0x1   :  { %s18_s13 = sshll.u32 %s2890_s12, 4  ;;  %s2866_s16 = scalar_lea.hbm %s3428_s2, 16640  ;;  %s19_s13 = int_to_ptr.vmem [resolvable:$true] %s18_s13 }
   0x2   :  { %p2867_p0 = scmp.ne.s32.totalorder %s3428_s2, %s2866_s16  ;;  %p2870_p1 = scmp.lt.u32.totalorder %s2866_s16, %s3428_s2 }
   0x4   :  { %p2872_p2 = pnand %p2870_p1, %p2867_p0 }
   0x6   :  { %2875 = shalt.err (!%p2872_p2)
}
   0x7   :  { %s2876_s21 = scalar_lea.vmem %s19_s13, 16640  ;;  %p2881_p4 = scmp.lt.s32.totalorder %s19_s13, %s19_s13 }
   0x8   :  { %p2877_p3 = scmp.ne.s32.totalorder %s19_s13, %s2876_s21  ;;  %p2882_p5 = scmp.lt.s32.totalorder %s2876_s21, %s2876_s21 }
   0xa   :  { %p2883_p6 = por %p2882_p5, %p2881_p4 }
   0xc   :  { %p2884_p7 = pnand %p2883_p6, %p2877_p3 }
   0xe   :  { %2887 = shalt.err (!%p2884_p7)
}
   0xf   :  { %s2891_s22 = smov 256   ;;  %s2892_s23 = smov 16  }
  0x10   :  { %24 = dma.hbm_to_vmem [thread:$0]  %s3428_s2, 16640, %s19_s13, [#allocation3], %s2891_s22, %s2891_s22, %s2892_s23  }
  0x11   :  { %2888 = dma.done.wait [#allocation3], 16640  }
  0x12   :  { %2889 = vsyncadd [#allocation3], 4294950656  ;;  %v30_v0 = vlaneseq  ;;  %v2893_v1 = vmov 0   ;;  %v90_v4 = vld [vmem:[%s3427_s1 + $0x10] sm:$0xff]  ;;  %v49_v5 = vld [vmem:[%s3427_s1] sm:$0xff]  ;;  %s2894_s6 = smov 2  }
  0x13   :  { %2785 = vset.pattern.permute.xlu1 %v2893_v1  ;;  %2784 = vset.pattern.permute.xlu0 %v2893_v1  ;;  %v28_v6 = vld [vmem:[%s3426_s0] sm:$0x3]  ;;  %v72_v8 = vld [vmem:[%s3427_s1 + $0x8] sm:$0xff]  ;;  %s2895_s7 = smov 1   ;;  %v107_v11 = vld [vmem:[%s3427_s1 + $0x18] sm:$0xff]  ;;  %s2896_s11 = smov 127  }
  0x14   :  { %v2936_v2 = vshrl.u32 %v30_v0, 7  ;;  %93 = vperm.xlu1 %2785, %v90_v4   ;;  %52 = vperm.xlu0 %2784, %v49_v5   ;;  %v132_v12 = vld [vmem:[%s3427_s1 + $0x20] sm:$0xff]  ;;  %s2897_s12 = smov 126   ;;  %v150_v13 = vld [vmem:[%s3427_s1 + $0x1a8] sm:$0xff]  ;;  %v2974_v18 = vand.u32 127, %v30_v0  ;;  %v2898_v60 = vmov 0.0  }
  0x15   :  { %257 = vmatprep.mubr.f32.mxu0 %v2898_v60  ;;  %v161_v61 = vld [vmem:[#allocation2 + $0x400] ss:$8 sm:$0x3]  ;;  %vm189_vm4 = vcmask 64512   ;;  %s2899_s24 = smov 125   ;;  %s2900_s25 = smov 124  }
  0x16   :  { %v2939_v3 = vsub.s32 0, %v2936_v2  ;;  %v36_v7 = vsub.s32 1, %v2936_v2  ;;  %vm46_vm0 = vcmp.lt.s32.totalorder %v2974_v18, 2  ;;  %vm69_vm1 = vcmp.lt.s32.totalorder %v2974_v18, 1  ;;  %v581_v2 = vld [vmem:[%s3427_s1 + $0x1b0] sm:$0xff]  ;;  %s2901_s26 = smov 123  }
  0x17   :  { %vm104_vm2 = vcmp.lt.s32.totalorder %v2974_v18, 127  ;;  %vm129_vm3 = vcmp.lt.s32.totalorder %v2974_v18, 126  ;;  %s2903_s27 = smov 121   ;;  %vm1720_vm5 = vcmp.lt.s32.totalorder %v2974_v18, 125  ;;  %vm1846_vm6 = vcmp.lt.s32.totalorder %v2974_v18, 124 }
  0x18   :  { %v33_v9 = vrot.slane %v28_v6, %v2939_v3  ;;  %75 = vperm.xlu0 %2784, %v72_v8   ;;  %v37_v10 = vrot.slane %v28_v6, %v36_v7  ;;  %v166_v1 = vrot.slane %v161_v61, %v2939_v3  ;;  %v170_v4 = vrot.slane %v161_v61, %v36_v7  ;;  %v625_v61 = vld [vmem:[#allocation2 + $0x90] sm:$0xff] }
  0x19   :  { %vm1384_vm7 = vcmask 130048   ;;  %vm1972_vm8 = vcmp.lt.s32.totalorder %v2974_v18, 123  ;;  %vm2098_vm9 = vcmp.lt.s32.totalorder %v2974_v18, 122  ;;  %vm2224_vm10 = vcmp.lt.s32.totalorder %v2974_v18, 121  ;;  %v2105_v18 = vld [vmem:[%s3427_s1 + $0x170] sm:$0xff] }
  0x1a   :  { %40 = vrot.lane.b32.xlu1 %v33_v9, %s2894_s6  ;;  %vm2389_vm11 = vcmask 261120  }
  0x1c   :  { %42 = vrot.lane.b32.xlu0 %v37_v10, %s2894_s6 }
  0x1e   :  { %65 = vrot.lane.b32.xlu1 %v33_v9, %s2895_s7 }
  0x20   :  { %67 = vrot.lane.b32.xlu0 %v37_v10, %s2895_s7 }
  0x22   :  { %110 = vperm.xlu1 %2785, %v107_v11  }
  0x24   :  { %135 = vperm.xlu0 %2784, %v132_v12  }
  0x26   :  { %100 = vrot.lane.b32.xlu1 %v33_v9, %s2896_s11 }
  0x28   :  { %102 = vrot.lane.b32.xlu0 %v37_v10, %s2896_s11 }
  0x2a   :  { %125 = vrot.lane.b32.xlu1 %v33_v9, %s2897_s12 }
  0x2c   :  { %127 = vrot.lane.b32.xlu0 %v37_v10, %s2897_s12 }
  0x2e   :  { %153 = vperm.xlu1 %2785, %v150_v13  }
  0x93   :  { %v94_v14 = vpop.permute.xlu1 %93  ;;  %v53_v15 = vpop.permute.xlu0 %52 }
  0x94   :  { %v96_v44 = vmul.f32 %v94_v14, %v33_v9  ;;  %v97_v45 = vmul.f32 %v94_v14, %v37_v10  ;;  %v188_v14 = vld [vmem:[%s3427_s1 + $0x30] sm:$0xff] }
  0x97   :  { %v76_v16 = vpop.permute.xlu0 %75  ;;  %v41_v17 = vpop.permute.xlu1 %40 }
  0x9b   :  { %v43_v19 = vpop.permute.xlu0 %42  ;;  %v66_v20 = vpop.permute.xlu1 %65 }
  0x9c   :  { %v47_v23 = vsel %vm46_vm0, %v41_v17, %v43_v19  ;;  %v48_v24 = vsel %vm46_vm0, %v43_v19, %v41_v17 }
  0x9d   :  { %v58_v29 = vrot.slane %v48_v24, %v2939_v3  ;;  %v62_v30 = vrot.slane %v47_v23, %v2939_v3  ;;  %v338_v24 = vld [vmem:[%s3427_s1 + $0x38] sm:$0xff] }
  0x9f   :  { %v68_v21 = vpop.permute.xlu0 %67  ;;  %v63_v35 = vmul.f32 %v58_v29, %v53_v15  ;;  %v64_v36 = vmul.f32 %v62_v30, %v53_v15  ;;  %v421_v29 = vld [vmem:[%s3427_s1 + $0x40] sm:$0xff] }
  0xa0   :  { %v70_v25 = vsel %vm69_vm1, %v66_v20, %v68_v21  ;;  %v71_v26 = vsel %vm69_vm1, %v68_v21, %v66_v20  ;;  %v181_v20 = vld [vmem:[%s3427_s1 + $0x28] sm:$0xff] }
  0xa1   :  { %v111_v22 = vpop.permute.xlu1 %110  ;;  %v81_v27 = vrot.slane %v71_v26, %v2939_v3  ;;  %v85_v28 = vrot.slane %v70_v25, %v2939_v3 }
  0xa3   :  { %v136_v31 = vpop.permute.xlu0 %135  ;;  %v86_v32 = vmul.f32 %v81_v27, %v76_v16  ;;  %v87_v33 = vmul.f32 %v85_v28, %v76_v16 }
  0xa5   :  { %v101_v34 = vpop.permute.xlu1 %100  ;;  %v88_v40 = vadd.f32 %v86_v32, %v63_v35  ;;  %v89_v41 = vadd.f32 %v87_v33, %v64_v36  ;;  %v608_v32 = vld [vmem:[#allocation2 + $0x8] sm:$0xff]  ;;  %v610_v33 = vld [vmem:[#allocation2 + $0x18] sm:$0xff]  ;;  %v609_v36 = vld [vmem:[#allocation2 + $0x10] sm:$0xff] }
  0xa6   :  { %v2522_v35 = vpack.c.bf16 %v610_v33, %v608_v32  ;;  %v647_v33 = vld [vmem:[#allocation2 + $0x140] sm:$0xff] }
  0xa7   :  { %v103_v37 = vpop.permute.xlu0 %102  ;;  %v99_v54 = vadd.f32 %v97_v45, %v89_v41  ;;  %v98_v55 = vadd.f32 %v96_v44, %v88_v40  ;;  %v611_v41 = vld [vmem:[#allocation2 + $0x20] sm:$0xff]  ;;  %v618_v44 = vld [vmem:[#allocation2 + $0x58] sm:$0xff] }
  0xa8   :  { %v105_v38 = vsel %vm104_vm2, %v101_v34, %v103_v37  ;;  %v106_v39 = vsel %vm104_vm2, %v103_v37, %v101_v34  ;;  %v607_v34 = vld [vmem:[#allocation2] sm:$0xff]  ;;  %v612_v37 = vld [vmem:[#allocation2 + $0x28] sm:$0xff]  ;;  %2523 = vmatprep.subr.bf16.mxu1 %v2522_v35 }
  0xa9   :  { %v116_v42 = vrot.slane %v105_v38, %v2939_v3  ;;  %v120_v43 = vrot.slane %v106_v39, %v2939_v3  ;;  %v126_v48 = vpop.permute.xlu1 %125  ;;  %v614_v38 = vld [vmem:[#allocation2 + $0x38] sm:$0xff]  ;;  %v2524_v39 = vpack.c.bf16 %v609_v36, %v607_v34  ;;  %v649_v34 = vld [vmem:[#allocation2 + $0x150] sm:$0xff]  ;;  %v652_v35 = vld [vmem:[#allocation2 + $0x168] sm:$0xff] }
  0xaa   :  { %v2526_v40 = vpack.c.bf16 %v614_v38, %v612_v37  ;;  %v654_v36 = vld [vmem:[#allocation2 + $0x178] sm:$0xff]  ;;  %v2564_v37 = vpack.c.bf16 %v649_v34, %v647_v33  ;;  %v756_v34 = vld [vmem:[%s3427_s1 + $0x60] sm:$0xff] }
  0xab   :  { %v121_v46 = vmul.f32 %v116_v42, %v111_v22  ;;  %v122_v47 = vmul.f32 %v120_v43, %v111_v22  ;;  %v128_v49 = vpop.permute.xlu0 %127  ;;  %v613_v42 = vld [vmem:[#allocation2 + $0x30] sm:$0xff]  ;;  %v616_v43 = vld [vmem:[#allocation2 + $0x48] sm:$0xff]  ;;  %2525 = vmatpush1.bf16.msra.mxu1 %v2524_v39  ;;  %v2566_v38 = vpack.c.bf16 %v654_v36, %v652_v35  ;;  %v651_v39 = vld [vmem:[#allocation2 + $0x160] sm:$0xff] }
  0xac   :  { %v130_v50 = vsel %vm129_vm3, %v126_v48, %v128_v49  ;;  %v131_v51 = vsel %vm129_vm3, %v128_v49, %v126_v48  ;;  %v2528_v45 = vpack.c.bf16 %v613_v42, %v611_v41  ;;  %2527 = vmatprep.subr.bf16.mxu1 %v2526_v40  ;;  %v617_v48 = vld [vmem:[#allocation2 + $0x50] sm:$0xff]  ;;  %v620_v49 = vld [vmem:[#allocation2 + $0x68] sm:$0xff]  ;;  %v658_v42 = vld [vmem:[#allocation2 + $0x198] sm:$0xff] }
  0xad   :  { %v141_v52 = vrot.slane %v130_v50, %v2939_v3  ;;  %v145_v53 = vrot.slane %v131_v51, %v2939_v3  ;;  %v124_v58 = vadd.f32 %v122_v47, %v99_v54  ;;  %v123_v59 = vadd.f32 %v121_v46, %v98_v55  ;;  %v154_v0 = vpop.permute.xlu1 %153  ;;  %v615_v47 = vld [vmem:[#allocation2 + $0x40] sm:$0xff]  ;;  %v622_v50 = vld [vmem:[#allocation2 + $0x78] sm:$0xff]  ;;  %v621_v54 = vld [vmem:[#allocation2 + $0x70] sm:$0xff] }
  0xae   :  { %v2530_v46 = vpack.c.bf16 %v618_v44, %v616_v43  ;;  %v2532_v51 = vpack.c.bf16 %v617_v48, %v615_v47  ;;  %v624_v55 = vld [vmem:[#allocation2 + $0x88] sm:$0xff]  ;;  %v653_v40 = vld [vmem:[#allocation2 + $0x170] sm:$0xff]  ;;  %v662_v48 = vld [vmem:[#allocation2 + $0x1b8] sm:$0xff] }
  0xaf   :  { %v146_v56 = vmul.f32 %v141_v52, %v136_v31  ;;  %v147_v57 = vmul.f32 %v145_v53, %v136_v31  ;;  %v504_v31 = vld [vmem:[%s3427_s1 + $0x48] sm:$0xff]  ;;  %2529 = vmatpush1.bf16.msra.mxu1 %v2528_v45  ;;  %v2534_v52 = vpack.c.bf16 %v622_v50, %v620_v49  ;;  %v619_v53 = vld [vmem:[#allocation2 + $0x60] sm:$0xff]  ;;  %v2568_v43 = vpack.c.bf16 %v653_v40, %v651_v39  ;;  %v748_v40 = vld [vmem:[%s3427_s1 + $0x50] sm:$0xff] }
  0xb0   :  { %2531 = vmatprep.subr.bf16.mxu1 %v2530_v46  ;;  %v656_v41 = vld [vmem:[#allocation2 + $0x188] sm:$0xff]  ;;  %v655_v45 = vld [vmem:[#allocation2 + $0x180] sm:$0xff]  ;;  %v657_v46 = vld [vmem:[#allocation2 + $0x190] sm:$0xff] }
  0xb1   :  { %v149_v62 = vadd.f32 %v147_v57, %v124_v58  ;;  %v148_v63 = vadd.f32 %v146_v56, %v123_v59  ;;  %v626_v56 = vld [vmem:[#allocation2 + $0x98] sm:$0xff]  ;;  %v2536_v57 = vpack.c.bf16 %v621_v54, %v619_v53  ;;  %v623_v59 = vld [vmem:[#allocation2 + $0x80] sm:$0xff]  ;;  %v2570_v44 = vpack.c.bf16 %v658_v42, %v656_v41  ;;  %v660_v47 = vld [vmem:[#allocation2 + $0x1a8] sm:$0xff] }
  0xb2   :  { %v2538_v58 = vpack.c.bf16 %v626_v56, %v624_v55  ;;  %v2572_v49 = vpack.c.bf16 %v657_v46, %v655_v45  ;;  %v2574_v50 = vpack.c.bf16 %v662_v48, %v660_v47  ;;  %v664_v54 = vld [vmem:[#allocation2 + $0x1c8] sm:$0xff]  ;;  %v666_v55 = vld [vmem:[#allocation2 + $0x1d8] sm:$0xff]  ;;  %v924_v45 = vld [vmem:[%s3427_s1 + $0x70] sm:$0xff] }
  0xb3   :  { %v156_v5 = vadd.f32 %v154_v0, %v148_v63  ;;  %v157_v6 = vadd.f32 %v154_v0, %v149_v62  ;;  %2533 = vmatpush1.bf16.msra.mxu1 %v2532_v51  ;;  %v628_v62 = vld [vmem:[#allocation2 + $0xa8] sm:$0xff]  ;;  %v630_v63 = vld [vmem:[#allocation2 + $0xb8] sm:$0xff]  ;;  %v2540_v0 = vpack.c.bf16 %v625_v61, %v623_v59  ;;  %v659_v51 = vld [vmem:[#allocation2 + $0x1a0] sm:$0xff]  ;;  %v2578_v56 = vpack.c.bf16 %v666_v55, %v664_v54 }
  0xb4   :  { %2535 = vmatprep.subr.bf16.mxu1 %v2534_v52  ;;  %v661_v52 = vld [vmem:[#allocation2 + $0x1b0] sm:$0xff]  ;;  %v668_v61 = vld [vmem:[#allocation2 + $0x1e8] sm:$0xff] }
  0xb5   :  { %v158_v8 = vmax.f32 %v156_v5, 0.0  ;;  %v159_v9 = vmax.f32 %v157_v6, 0.0  ;;  %v629_v5 = vld [vmem:[#allocation2 + $0xb0] sm:$0xff]  ;;  %v632_v6 = vld [vmem:[#allocation2 + $0xc8] sm:$0xff]  ;;  %v2576_v53 = vpack.c.bf16 %v661_v52, %v659_v51  ;;  %v1226_v52 = vld [vmem:[#allocation2 + $0x218] sm:$0xff] }
  0xb6   :  { %v757_v39 = vld [vmem:[%s3427_s1 + $0x68] sm:$0xff] }
  0xb7   :  { %v173_v10 = vmul.f32 %v166_v1, %v158_v8  ;;  %v174_v11 = vmul.f32 %v170_v4, %v159_v9  ;;  %2537 = vmatpush1.bf16.msra.mxu1 %v2536_v57  ;;  %v2542_v1 = vpack.c.bf16 %v630_v63, %v628_v62  ;;  %v627_v4 = vld [vmem:[#allocation2 + $0xa0] sm:$0xff]  ;;  %v634_v8 = vld [vmem:[#allocation2 + $0xd8] sm:$0xff]  ;;  %v1224_v51 = vld [vmem:[#allocation2 + $0x208] sm:$0xff] }
  0xb8   :  { %2539 = vmatprep.subr.bf16.mxu1 %v2538_v58  ;;  %v2544_v9 = vpack.c.bf16 %v629_v5, %v627_v4  ;;  %v663_v57 = vld [vmem:[#allocation2 + $0x1c0] sm:$0xff]  ;;  %v665_v58 = vld [vmem:[#allocation2 + $0x1d0] sm:$0xff]  ;;  %v670_v62 = vld [vmem:[#allocation2 + $0x1f8] sm:$0xff]  ;;  %v2586_v54 = vpack.c.bf16 %v1226_v52, %v1224_v51 }
  0xb9   :  { %184 = vrot.lane.b32.xlu1 %v174_v11, %s2895_s7  ;;  %182 = vrot.lane.b32.xlu0 %v173_v10, %s2895_s7  ;;  %v2580_v59 = vpack.c.bf16 %v665_v58, %v663_v57  ;;  %v667_v63 = vld [vmem:[#allocation2 + $0x1e0] sm:$0xff]  ;;  %v1225_v58 = vld [vmem:[#allocation2 + $0x210] sm:$0xff] }
  0xba   :  { %v1223_v57 = vld [vmem:[#allocation2 + $0x200] sm:$0xff]  ;;  %v1261_v52 = vld [vmem:[#allocation2 + $0x330] sm:$0xff] }
  0xbb   :  { %2541 = vmatpush1.bf16.msra.mxu1 %v2540_v0  ;;  %v2582_v0 = vpack.c.bf16 %v670_v62, %v668_v61  ;;  %v1230_v61 = vld [vmem:[#allocation2 + $0x238] sm:$0xff]  ;;  %v1114_v62 = vld [vmem:[%s3427_s1 + $0x90] sm:$0xff]  ;;  %v1259_v51 = vld [vmem:[#allocation2 + $0x320] sm:$0xff] }
  0xbc   :  { %2543 = vmatprep.subr.bf16.mxu1 %v2542_v1  ;;  %v669_v1 = vld [vmem:[#allocation2 + $0x1f0] sm:$0xff] }
  0xbd   :  { %177 = vrot.lane.b32.xlu1 %v174_v11, %s2894_s6  ;;  %175 = vrot.lane.b32.xlu0 %v173_v10, %s2894_s6  ;;  %v2584_v4 = vpack.c.bf16 %v669_v1, %v667_v63  ;;  %v2588_v63 = vpack.c.bf16 %v1225_v58, %v1223_v57  ;;  %v1227_v1 = vld [vmem:[#allocation2 + $0x220] sm:$0xff]  ;;  %v1265_v58 = vld [vmem:[#allocation2 + $0x350] sm:$0xff] }
  0xbe   :  { %v1263_v57 = vld [vmem:[#allocation2 + $0x340] sm:$0xff] }
  0xbf   :  { %2545 = vmatpush1.bf16.msra.mxu1 %v2544_v9 }
  0xc1   :  { %417 = vrot.lane.b32.xlu1 %v174_v11, %s2896_s11  ;;  %415 = vrot.lane.b32.xlu0 %v173_v10, %s2896_s11 }
  0xc5   :  { %500 = vrot.lane.b32.xlu1 %v174_v11, %s2897_s12  ;;  %498 = vrot.lane.b32.xlu0 %v173_v10, %s2897_s12 }
  0xc9   :  { %584 = vperm.xlu0 %2784, %v581_v2   ;;  %v633_v2 = vld [vmem:[#allocation2 + $0xd0] sm:$0xff] }
 0x12b   :  { %v185_v3 = vpop.permute.xlu1 %184  ;;  %v183_v7 = vpop.permute.xlu0 %182 }
 0x12c   :  { %v186_v12 = vsel %vm69_vm1, %v183_v7, %v185_v3  ;;  %v187_v13 = vsel %vm69_vm1, %v185_v3, %v183_v7  ;;  %v636_v3 = vld [vmem:[#allocation2 + $0xe8] sm:$0xff]  ;;  %v638_v7 = vld [vmem:[#allocation2 + $0xf8] sm:$0xff] }
 0x12d   :  { %193 = vmatprep.subr.mxu0 %v186_v12 }
 0x12e   :  { %194 = vmatpush1.msra.mxu0 %v187_v13  ;;  %v2550_v13 = vpack.c.bf16 %v638_v7, %v636_v3 }
 0x12f   :  { %v178_v15 = vpop.permute.xlu1 %177  ;;  %2474 = vmatmul.mubr.msk.f32.vlgmr.msra.gmra.mrb[0].mxu0 %vm189_vm4, %v188_v14  ;;  %v176_v16 = vpop.permute.xlu0 %175  ;;  %v635_v14 = vld [vmem:[#allocation2 + $0xe0] sm:$0xff] }
 0x130   :  { %v180_v17 = vsel %vm46_vm0, %v178_v15, %v176_v16  ;;  %v179_v19 = vsel %vm46_vm0, %v176_v16, %v178_v15  ;;  %331 = vmatprep.mubr.f32.mxu0 %v2898_v60  ;;  %v637_v15 = vld [vmem:[#allocation2 + $0xf0] sm:$0xff]  ;;  %v640_v16 = vld [vmem:[#allocation2 + $0x108] sm:$0xff] }
 0x131   :  { %267 = vmatprep.subr.mxu0 %v179_v19  ;;  %v2552_v19 = vpack.c.bf16 %v637_v15, %v635_v14 }
 0x132   :  { %268 = vmatpush1.msra.mxu0 %v180_v17  ;;  %v642_v17 = vld [vmem:[#allocation2 + $0x118] sm:$0xff] }
 0x133   :  { %342 = vmatprep.subr.mxu0 %v174_v11  ;;  %v418_v21 = vpop.permute.xlu1 %417  ;;  %v416_v22 = vpop.permute.xlu0 %415  ;;  %v631_v11 = vld [vmem:[#allocation2 + $0xc0] sm:$0xff] }
 0x134   :  { %v420_v23 = vsel %vm104_vm2, %v418_v21, %v416_v22  ;;  %v419_v27 = vsel %vm104_vm2, %v416_v22, %v418_v21  ;;  %v2548_v12 = vpack.c.bf16 %v633_v2, %v631_v11  ;;  %v639_v21 = vld [vmem:[#allocation2 + $0x100] sm:$0xff]  ;;  %v641_v22 = vld [vmem:[#allocation2 + $0x110] sm:$0xff] }
 0x137   :  { %2475 = vmatmul.mubr.msk.f32.vlgmr.msra.gmra.mrb[0].mxu0 %vm189_vm4, %v181_v20  ;;  %v501_v25 = vpop.permute.xlu1 %500  ;;  %v499_v26 = vpop.permute.xlu0 %498  ;;  %v2554_v20 = vpack.c.bf16 %v642_v17, %v640_v16 }
 0x138   :  { %343 = vmatpush1.msra.mxu0 %v173_v10  ;;  %406 = vmatprep.mubr.f32.mxu0 %v2898_v60  ;;  %v503_v28 = vsel %vm129_vm3, %v501_v25, %v499_v26  ;;  %v502_v30 = vsel %vm129_vm3, %v499_v26, %v501_v25  ;;  %v2546_v10 = vpack.c.bf16 %v634_v8, %v632_v6 }
 0x139   :  { %425 = vmatprep.subr.mxu0 %v420_v23  ;;  %v644_v23 = vld [vmem:[#allocation2 + $0x128] sm:$0xff]  ;;  %v2556_v25 = vpack.c.bf16 %v641_v22, %v639_v21 }
 0x13a   :  { %2547 = vmatprep.subr.bf16.mxu1 %v2546_v10 }
 0x13b   :  { %2549 = vmatpush1.bf16.msra.mxu1 %v2548_v12 }
 0x13c   :  { %2551 = vmatprep.subr.bf16.mxu1 %v2550_v13 }
 0x13f   :  { %2476 = vmatmul.mubr.msk.f32.vlgmr.msra.gmra.mrb[0].mxu0 %vm189_vm4, %v338_v24  ;;  %v646_v24 = vld [vmem:[#allocation2 + $0x138] sm:$0xff]  ;;  %2553 = vmatpush1.bf16.msra.mxu1 %v2552_v19 }
 0x140   :  { %426 = vmatpush1.msra.mxu0 %v419_v27  ;;  %489 = vmatprep.mubr.f32.mxu0 %v2898_v60  ;;  %v2558_v26 = vpack.c.bf16 %v646_v24, %v644_v23  ;;  %v643_v27 = vld [vmem:[#allocation2 + $0x120] sm:$0xff] }
 0x141   :  { %508 = vmatprep.subr.mxu0 %v503_v28  ;;  %2555 = vmatprep.subr.bf16.mxu1 %v2554_v20  ;;  %v645_v28 = vld [vmem:[#allocation2 + $0x130] sm:$0xff] }
 0x143   :  { %2557 = vmatpush1.bf16.msra.mxu1 %v2556_v25 }
 0x144   :  { %2559 = vmatprep.subr.bf16.mxu1 %v2558_v26 }
 0x147   :  { %2477 = vmatmul.mubr.msk.f32.vlgmr.msra.gmra.mrb[0].mxu0 %vm189_vm4, %v421_v29  ;;  %v648_v29 = vld [vmem:[#allocation2 + $0x148] sm:$0xff] }
 0x148   :  { %509 = vmatpush1.msra.mxu0 %v502_v30  ;;  %572 = vmatprep.mubr.f32.mxu0 %v2898_v60  ;;  %v650_v30 = vld [vmem:[#allocation2 + $0x158] sm:$0xff]  ;;  %v585_v5 = vpop.permute.xlu0 %584 }
 0x149   :  { %v2562_v32 = vpack.c.bf16 %v650_v30, %v648_v29  ;;  %v1204_v29 = vld [vmem:[%s3427_s1 + $0x1c0] sm:$0xff] }
 0x14f   :  { %2478 = vmatmul.mubr.msk.f32.vlgmr.msra.gmra.mrb[0].mxu0 %vm189_vm4, %v504_v31  ;;  %v2560_v31 = vpack.c.bf16 %v645_v28, %v643_v27  ;;  %v1203_v28 = vld [vmem:[%s3427_s1 + $0x1b8] sm:$0xff] }
 0x150   :  { %828 = vmatprep.mubr.f32.mxu0 %v2898_v60 }
 0x151   :  { %2561 = vmatpush1.bf16.msra.mxu1 %v2560_v31 }
 0x152   :  { %2563 = vmatprep.subr.bf16.mxu1 %v2562_v32 }
 0x155   :  { %2565 = vmatpush1.bf16.msra.mxu1 %v2564_v37 }
 0x156   :  { %2567 = vmatprep.subr.bf16.mxu1 %v2566_v38 }
 0x159   :  { %2569 = vmatpush1.bf16.msra.mxu1 %v2568_v43 }
 0x15a   :  { %2571 = vmatprep.subr.bf16.mxu1 %v2570_v44  ;;  %v749_v44 = vld [vmem:[%s3427_s1 + $0x58] sm:$0xff] }
 0x15d   :  { %2573 = vmatpush1.bf16.msra.mxu1 %v2572_v49 }
 0x15e   :  { %2575 = vmatprep.subr.bf16.mxu1 %v2574_v50  ;;  %v925_v50 = vld [vmem:[%s3427_s1 + $0x78] sm:$0xff] }
 0x161   :  { %2577 = vmatpush1.bf16.msra.mxu1 %v2576_v53  ;;  %v1019_v53 = vld [vmem:[%s3427_s1 + $0x80] sm:$0xff] }
 0x162   :  { %2579 = vmatprep.subr.bf16.mxu1 %v2578_v56  ;;  %v1020_v56 = vld [vmem:[%s3427_s1 + $0x88] sm:$0xff] }
 0x165   :  { %2581 = vmatpush1.bf16.msra.mxu1 %v2580_v59  ;;  %v1228_v59 = vld [vmem:[#allocation2 + $0x228] sm:$0xff] }
 0x166   :  { %2583 = vmatprep.subr.bf16.mxu1 %v2582_v0  ;;  %v2590_v0 = vpack.c.bf16 %v1230_v61, %v1228_v59  ;;  %v1268_v59 = vld [vmem:[#allocation2 + $0x368] sm:$0xff]  ;;  %v1270_v61 = vld [vmem:[#allocation2 + $0x378] sm:$0xff] }
 0x169   :  { %2585 = vmatpush1.bf16.msra.mxu1 %v2584_v4  ;;  %v1229_v4 = vld [vmem:[#allocation2 + $0x230] sm:$0xff] }
 0x222   :  { %v574_v6 = vpop.f32.mrb[0].mxu0 }
 0x223   :  { %v587_v8 = vadd.f32 %v585_v5, %v574_v6  ;;  %v576_v9 = vpop.f32.mrb[1].mxu0  ;;  %v1234_v6 = vld [vmem:[#allocation2 + $0x258] sm:$0xff] }
 0x224   :  { %v588_v10 = vadd.f32 %v585_v5, %v576_v9  ;;  %v1232_v5 = vld [vmem:[#allocation2 + $0x248] sm:$0xff]  ;;  %v2592_v9 = vpack.c.bf16 %v1229_v4, %v1227_v1  ;;  %v1269_v1 = vld [vmem:[#allocation2 + $0x370] sm:$0xff] }
 0x225   :  { %v589_v11 = vmax.f32 %v587_v8, 0.0  ;;  %v1115_v8 = vld [vmem:[%s3427_s1 + $0x98] sm:$0xff]  ;;  %v1272_v4 = vld [vmem:[#allocation2 + $0x388] sm:$0xff] }
 0x226   :  { %v590_v2 = vmax.f32 %v588_v10, 0.0  ;;  %v2594_v10 = vpack.c.bf16 %v1234_v6, %v1232_v5  ;;  %v1274_v5 = vld [vmem:[#allocation2 + $0x398] sm:$0xff] }
 0x228   :  { %v2791_v3 = vpack.i.bf16 %v590_v2, %v589_v11 }
 0x22a   :  { %2792 = vrot.lane.b32.xlu0 %v2791_v3, %s2897_s12  ;;  %2787 = vrot.lane.b32.xlu1 %v2791_v3, %s2896_s11  ;;  %v1236_v3 = vld [vmem:[#allocation2 + $0x268] sm:$0xff] }
 0x29c   :  { %v2793_v7 = vpop.permute.xlu0 %2792  ;;  %v2788_v12 = vpop.permute.xlu1 %2787 }
 0x29d   :  { %v2795_v13 = vunpack.i.h.bf16 %v2793_v7  ;;  %v2794_v14 = vunpack.i.l.bf16 %v2793_v7  ;;  %v2790_v15 = vunpack.i.h.bf16 %v2788_v12  ;;  %v2789_v16 = vunpack.i.l.bf16 %v2788_v12  ;;  %v1238_v7 = vld [vmem:[#allocation2 + $0x278] sm:$0xff] }
 0x29f   :  { %v601_v17 = vsel %vm129_vm3, %v2794_v14, %v2795_v13  ;;  %v595_v19 = vsel %vm104_vm2, %v2789_v16, %v2790_v15  ;;  %v596_v20 = vsel %vm104_vm2, %v2790_v15, %v2789_v16  ;;  %v602_v21 = vsel %vm129_vm3, %v2795_v13, %v2794_v14  ;;  %v1235_v14 = vld [vmem:[#allocation2 + $0x260] sm:$0xff]  ;;  %v1237_v15 = vld [vmem:[#allocation2 + $0x270] sm:$0xff]  ;;  %v1240_v16 = vld [vmem:[#allocation2 + $0x288] sm:$0xff] }
 0x2a0   :  { %v604_v22 = vmax.f32 %v596_v20, %v602_v21  ;;  %v603_v23 = vmax.f32 %v595_v19, %v601_v17  ;;  %v2598_v13 = vpack.c.bf16 %v1238_v7, %v1236_v3  ;;  %v1242_v17 = vld [vmem:[#allocation2 + $0x298] sm:$0xff]  ;;  %v2600_v19 = vpack.c.bf16 %v1237_v15, %v1235_v14  ;;  %v1239_v21 = vld [vmem:[#allocation2 + $0x280] sm:$0xff]  ;;  %v1280_v14 = vld [vmem:[#allocation2 + $0x3c8] sm:$0xff] }
 0x2a1   :  { %v2602_v20 = vpack.c.bf16 %v1242_v17, %v1240_v16  ;;  %v1282_v15 = vld [vmem:[#allocation2 + $0x3d8] sm:$0xff] }
 0x2a2   :  { %v606_v24 = vmax.f32 %v590_v2, %v604_v22  ;;  %v605_v25 = vmax.f32 %v589_v11, %v603_v23  ;;  %v1231_v11 = vld [vmem:[#allocation2 + $0x240] sm:$0xff]  ;;  %v1233_v2 = vld [vmem:[#allocation2 + $0x250] sm:$0xff]  ;;  %v1244_v23 = vld [vmem:[#allocation2 + $0x2a8] sm:$0xff]  ;;  %v2642_v17 = vpack.c.bf16 %v1282_v15, %v1280_v14 }
 0x2a3   :  { %v2596_v12 = vpack.c.bf16 %v1233_v2, %v1231_v11  ;;  %v1241_v22 = vld [vmem:[#allocation2 + $0x290] sm:$0xff]  ;;  %v1276_v11 = vld [vmem:[#allocation2 + $0x3a8] sm:$0xff]  ;;  %v1278_v2 = vld [vmem:[#allocation2 + $0x3b8] sm:$0xff] }
 0x2a4   :  { %735 = vmatprep.mubr.f32.mxu1 %v606_v24  ;;  %v1246_v24 = vld [vmem:[#allocation2 + $0x2b8] sm:$0xff]  ;;  %v2638_v7 = vpack.c.bf16 %v1278_v2, %v1276_v11 }
 0x2a5   :  { %736 = vmatmul.mubr.f32.vlgmr.msra.gmra.mrb[0].mxu1 %v605_v25  ;;  %v2604_v25 = vpack.c.bf16 %v1241_v22, %v1239_v21  ;;  %v1284_v22 = vld [vmem:[#allocation2 + $0x3e8] sm:$0xff] }
 0x2a6   :  { %1679 = vmatprep.mubr.f32.mxu1 %v2898_v60 }
 0x378   :  { %v737_v26 = vpop.f32.mrb[0].mxu1 }
 0x379   :  { %750 = vrot.lane.b32.xlu1 %v737_v26, %s2895_s7  ;;  %v739_v27 = vpop.f32.mrb[1].mxu1 }
 0x37a   :  { %752 = vrot.lane.b32.xlu0 %v739_v27, %s2895_s7 }
 0x37d   :  { %742 = vrot.lane.b32.xlu1 %v737_v26, %s2894_s6 }
 0x37e   :  { %744 = vrot.lane.b32.xlu0 %v739_v27, %s2894_s6 }
 0x381   :  { %1013 = vrot.lane.b32.xlu1 %v737_v26, %s2896_s11 }
 0x382   :  { %1015 = vrot.lane.b32.xlu0 %v739_v27, %s2896_s11 }
 0x385   :  { %1108 = vrot.lane.b32.xlu1 %v737_v26, %s2897_s12 }
 0x386   :  { %1110 = vrot.lane.b32.xlu0 %v739_v27, %s2897_s12 }
 0x389   :  { %1207 = vperm.xlu1 %2785, %v1203_v28   ;;  %v1245_v28 = vld [vmem:[#allocation2 + $0x2b0] sm:$0xff] }
 0x38a   :  { %1212 = vperm.xlu0 %2784, %v1204_v29   ;;  %v1248_v29 = vld [vmem:[#allocation2 + $0x2c8] sm:$0xff] }
 0x3eb   :  { %v751_v30 = vpop.permute.xlu1 %750 }
 0x3ec   :  { %v753_v31 = vpop.permute.xlu0 %752 }
 0x3ed   :  { %v755_v32 = vsel %vm69_vm1, %v753_v31, %v751_v30  ;;  %v754_v33 = vsel %vm69_vm1, %v751_v30, %v753_v31  ;;  %v1250_v30 = vld [vmem:[#allocation2 + $0x2d8] sm:$0xff] }
 0x3ee   :  { %764 = vmatprep.subr.mxu0 %v754_v33  ;;  %v1247_v33 = vld [vmem:[#allocation2 + $0x2c0] sm:$0xff] }
 0x3ef   :  { %v743_v35 = vpop.permute.xlu1 %742  ;;  %765 = vmatpush1.msra.mxu0 %v755_v32  ;;  %v2610_v32 = vpack.c.bf16 %v1250_v30, %v1248_v29 }
 0x3f0   :  { %2479 = vmatmul.mubr.msk.f32.vlgmr.msra.gmra.mrb[2].mxu0 %vm189_vm4, %v756_v34  ;;  %v745_v36 = vpop.permute.xlu0 %744  ;;  %v1249_v34 = vld [vmem:[#allocation2 + $0x2d0] sm:$0xff] }
 0x3f1   :  { %v747_v37 = vsel %vm46_vm0, %v745_v36, %v743_v35  ;;  %v746_v38 = vsel %vm46_vm0, %v743_v35, %v745_v36  ;;  %834 = vmatprep.mubr.f32.mxu0 %v2898_v60  ;;  %v1252_v35 = vld [vmem:[#allocation2 + $0x2e8] sm:$0xff]  ;;  %v1254_v36 = vld [vmem:[#allocation2 + $0x2f8] sm:$0xff] }
 0x3f2   :  { %847 = vmatprep.subr.mxu0 %v746_v38  ;;  %v2614_v38 = vpack.c.bf16 %v1254_v36, %v1252_v35 }
 0x3f3   :  { %848 = vmatpush1.msra.mxu0 %v747_v37  ;;  %v1014_v41 = vpop.permute.xlu1 %1013  ;;  %v2612_v37 = vpack.c.bf16 %v1249_v34, %v1247_v33 }
 0x3f4   :  { %2480 = vmatmul.mubr.msk.f32.gmra.mrb[4].mxu0 %vm189_vm4, %v757_v39  ;;  %932 = vmatprep.subr.mxu0 %v739_v27  ;;  %v1016_v42 = vpop.permute.xlu0 %1015  ;;  %v1243_v27 = vld [vmem:[#allocation2 + $0x2a0] sm:$0xff] }
 0x3f5   :  { %911 = vmatprep.mubr.f32.mxu0 %v2898_v60  ;;  %v1018_v43 = vsel %vm104_vm2, %v1016_v42, %v1014_v41  ;;  %v1017_v48 = vsel %vm104_vm2, %v1014_v41, %v1016_v42  ;;  %v2608_v31 = vpack.c.bf16 %v1245_v28, %v1243_v27  ;;  %v1251_v39 = vld [vmem:[#allocation2 + $0x2e0] sm:$0xff]  ;;  %v1256_v41 = vld [vmem:[#allocation2 + $0x308] sm:$0xff]  ;;  %v1258_v42 = vld [vmem:[#allocation2 + $0x318] sm:$0xff] }
 0x3f7   :  { %v1109_v46 = vpop.permute.xlu1 %1108 }
 0x3f8   :  { %2481 = vmatmul.mubr.msk.f32.vlgmr.msra.gmra.mrb[2].mxu0 %vm189_vm4, %v748_v40  ;;  %v1111_v47 = vpop.permute.xlu0 %1110  ;;  %v1253_v40 = vld [vmem:[#allocation2 + $0x2f0] sm:$0xff] }
 0x3f9   :  { %933 = vmatpush1.msra.mxu0 %v737_v26  ;;  %917 = vmatprep.mubr.f32.mxu0 %v2898_v60  ;;  %v1113_v49 = vsel %vm129_vm3, %v1111_v47, %v1109_v46  ;;  %v1112_v55 = vsel %vm129_vm3, %v1109_v46, %v1111_v47  ;;  %v2606_v26 = vpack.c.bf16 %v1246_v24, %v1244_v23  ;;  %v1257_v46 = vld [vmem:[#allocation2 + $0x310] sm:$0xff]  ;;  %v1260_v47 = vld [vmem:[#allocation2 + $0x328] sm:$0xff]  ;;  %v1286_v23 = vld [vmem:[#allocation2 + $0x3f8] sm:$0xff] }
 0x3fa   :  { %1027 = vmatprep.subr.mxu0 %v1018_v43  ;;  %v2616_v43 = vpack.c.bf16 %v1253_v40, %v1251_v39  ;;  %v2646_v24 = vpack.c.bf16 %v1286_v23, %v1284_v22 }
 0x3fc   :  { %2482 = vmatmul.mubr.msk.f32.gmra.mrb[4].mxu0 %vm189_vm4, %v749_v44  ;;  %v2618_v44 = vpack.c.bf16 %v1258_v42, %v1256_v41 }
 0x3fd   :  { %996 = vmatprep.mubr.f32.mxu0 %v2898_v60 }
 0x400   :  { %2483 = vmatmul.mubr.msk.f32.vlgmr.msra.gmra.mrb[2].mxu0 %vm189_vm4, %v924_v45  ;;  %v1255_v45 = vld [vmem:[#allocation2 + $0x300] sm:$0xff] }
 0x401   :  { %1028 = vmatpush1.msra.mxu0 %v1017_v48  ;;  %1002 = vmatprep.mubr.f32.mxu0 %v2898_v60  ;;  %v1262_v48 = vld [vmem:[#allocation2 + $0x338] sm:$0xff] }
 0x402   :  { %1122 = vmatprep.subr.mxu0 %v1113_v49  ;;  %v2620_v49 = vpack.c.bf16 %v1257_v46, %v1255_v45 }
 0x404   :  { %2484 = vmatmul.mubr.msk.f32.gmra.mrb[4].mxu0 %vm189_vm4, %v925_v50  ;;  %v2622_v50 = vpack.c.bf16 %v1262_v48, %v1260_v47 }
 0x405   :  { %1091 = vmatprep.mubr.f32.mxu0 %v2898_v60 }
 0x408   :  { %2485 = vmatmul.mubr.msk.f32.vlgmr.msra.gmra.mrb[2].mxu0 %vm189_vm4, %v1019_v53  ;;  %v1264_v53 = vld [vmem:[#allocation2 + $0x348] sm:$0xff]  ;;  %v1208_v28 = vpop.permute.xlu1 %1207 }
 0x409   :  { %1123 = vmatpush1.msra.mxu0 %v1112_v55  ;;  %1097 = vmatprep.mubr.f32.mxu0 %v2898_v60  ;;  %v2624_v55 = vpack.c.bf16 %v1261_v52, %v1259_v51  ;;  %v1213_v33 = vpop.permute.xlu0 %1212  ;;  %v2343_v51 = vld [vmem:[%s3427_s1 + $0x1d0] sm:$0xff]  ;;  %v2344_v52 = vld [vmem:[%s3427_s1 + $0x1d8] sm:$0xff] }
 0x40a   :  { %2587 = vmatprep.subr.bf16.mxu0 %v2586_v54  ;;  %v1266_v54 = vld [vmem:[#allocation2 + $0x358] sm:$0xff] }
 0x40c   :  { %2486 = vmatmul.mubr.msk.f32.gmra.mrb[4].mxu0 %vm189_vm4, %v1020_v56  ;;  %v2626_v56 = vpack.c.bf16 %v1266_v54, %v1264_v53  ;;  %v2345_v53 = vld [vmem:[%s3427_s1 + $0x1e0] sm:$0xff]  ;;  %v2383_v54 = vld [vmem:[%s3427_s1 + $0x1e8] sm:$0xf] }
 0x40d   :  { %1186 = vmatprep.mubr.f32.mxu0 %v2898_v60 }
 0x410   :  { %2487 = vmatmul.mubr.msk.f32.vlgmr.msra.gmra.mrb[2].mxu0 %vm189_vm4, %v1114_v62  ;;  %v2628_v62 = vpack.c.bf16 %v1265_v58, %v1263_v57 }
 0x411   :  { %1192 = vmatprep.mubr.f32.mxu0 %v2898_v60  ;;  %2589 = vmatpush1.bf16.msra.mxu0 %v2588_v63  ;;  %v2630_v63 = vpack.c.bf16 %v1270_v61, %v1268_v59 }
 0x412   :  { %2591 = vmatprep.subr.bf16.mxu0 %v2590_v0  ;;  %v1267_v0 = vld [vmem:[#allocation2 + $0x360] sm:$0xff] }
 0x413   :  { %v2632_v6 = vpack.c.bf16 %v1269_v1, %v1267_v0 }
 0x414   :  { %2488 = vmatmul.mubr.msk.f32.gmra.mrb[4].mxu0 %vm189_vm4, %v1115_v8  ;;  %v2634_v8 = vpack.c.bf16 %v1274_v5, %v1272_v4 }
 0x415   :  { %2593 = vmatpush1.bf16.msra.mxu0 %v2592_v9  ;;  %v1271_v9 = vld [vmem:[#allocation2 + $0x380] sm:$0xff] }
 0x416   :  { %2595 = vmatprep.subr.bf16.mxu0 %v2594_v10  ;;  %v1273_v10 = vld [vmem:[#allocation2 + $0x390] sm:$0xff] }
 0x417   :  { %v2636_v3 = vpack.c.bf16 %v1273_v10, %v1271_v9 }
 0x419   :  { %2597 = vmatpush1.bf16.msra.mxu0 %v2596_v12  ;;  %v1275_v12 = vld [vmem:[#allocation2 + $0x3a0] sm:$0xff] }
 0x41a   :  { %2599 = vmatprep.subr.bf16.mxu0 %v2598_v13  ;;  %v1277_v13 = vld [vmem:[#allocation2 + $0x3b0] sm:$0xff] }
 0x41b   :  { %v2640_v16 = vpack.c.bf16 %v1277_v13, %v1275_v12  ;;  %v1599_v13 = vld [vmem:[%s3427_s1 + $0xe0] sm:$0xff] }
 0x41d   :  { %2601 = vmatpush1.bf16.msra.mxu0 %v2600_v19  ;;  %v1279_v19 = vld [vmem:[#allocation2 + $0x3c0] sm:$0xff] }
 0x41e   :  { %2603 = vmatprep.subr.bf16.mxu0 %v2602_v20  ;;  %v1281_v20 = vld [vmem:[#allocation2 + $0x3d0] sm:$0xff] }
 0x41f   :  { %v2644_v21 = vpack.c.bf16 %v1281_v20, %v1279_v19 }
 0x421   :  { %2605 = vmatpush1.bf16.msra.mxu0 %v2604_v25  ;;  %v1283_v25 = vld [vmem:[#allocation2 + $0x3e0] sm:$0xff] }
 0x422   :  { %2607 = vmatprep.subr.bf16.mxu0 %v2606_v26  ;;  %v1285_v26 = vld [vmem:[#allocation2 + $0x3f0] sm:$0xff] }
 0x423   :  { %v2648_v27 = vpack.c.bf16 %v1285_v26, %v1283_v25  ;;  %v1600_v25 = vld [vmem:[%s3427_s1 + $0xe8] sm:$0xff] }
 0x425   :  { %2609 = vmatpush1.bf16.msra.mxu0 %v2608_v31 }
 0x426   :  { %2611 = vmatprep.subr.bf16.mxu0 %v2610_v32 }
 0x429   :  { %2613 = vmatpush1.bf16.msra.mxu0 %v2612_v37 }
 0x42a   :  { %2615 = vmatprep.subr.bf16.mxu0 %v2614_v38 }
 0x42d   :  { %2617 = vmatpush1.bf16.msra.mxu0 %v2616_v43 }
 0x42e   :  { %2619 = vmatprep.subr.bf16.mxu0 %v2618_v44 }
 0x431   :  { %2621 = vmatpush1.bf16.msra.mxu0 %v2620_v49 }
 0x432   :  { %2623 = vmatprep.subr.bf16.mxu0 %v2622_v50  ;;  %v2342_v50 = vld [vmem:[%s3427_s1 + $0x1c8] sm:$0xff] }
 0x435   :  { %2625 = vmatpush1.bf16.msra.mxu0 %v2624_v55 }
 0x436   :  { %2627 = vmatprep.subr.bf16.mxu0 %v2626_v56 }
 0x439   :  { %2629 = vmatpush1.bf16.msra.mxu0 %v2628_v62 }
 0x43a   :  { %2631 = vmatprep.subr.bf16.mxu0 %v2630_v63 }
 0x43d   :  { %2633 = vmatpush1.bf16.msra.mxu0 %v2632_v6 }
 0x43e   :  { %2635 = vmatprep.subr.bf16.mxu0 %v2634_v8 }
 0x441   :  { %2637 = vmatpush1.bf16.msra.mxu0 %v2636_v3 }
 0x442   :  { %2639 = vmatprep.subr.bf16.mxu0 %v2638_v7 }
 0x445   :  { %2641 = vmatpush1.bf16.msra.mxu0 %v2640_v16 }
 0x446   :  { %2643 = vmatprep.subr.bf16.mxu0 %v2642_v17 }
 0x449   :  { %2645 = vmatpush1.bf16.msra.mxu0 %v2644_v21 }
 0x44a   :  { %2647 = vmatprep.subr.bf16.mxu0 %v2646_v24 }
 0x44d   :  { %2649 = vmatpush1.bf16.msra.mxu0 %v2648_v27 }
 0x4e3   :  { %v1188_v29 = vpop.f32.mrb[2].mxu0 }
 0x4e4   :  { %v1215_v30 = vadd.f32 %v1208_v28, %v1188_v29  ;;  %v1190_v31 = vpop.f32.mrb[3].mxu0 }
 0x4e5   :  { %v1216_v32 = vadd.f32 %v1208_v28, %v1190_v31  ;;  %v1601_v31 = vld [vmem:[%s3427_s1 + $0xf0] sm:$0xff] }
 0x4e6   :  { %v1219_v36 = vmax.f32 %v1215_v30, 0.0 }
 0x4e7   :  { %v1220_v34 = vmax.f32 %v1216_v32, 0.0  ;;  %v1194_v35 = vpop.f32.mrb[4].mxu0 }
 0x4e8   :  { %v1217_v37 = vadd.f32 %v1213_v33, %v1194_v35  ;;  %v1196_v38 = vpop.f32.mrb[5].mxu0 }
 0x4e9   :  { %v1218_v39 = vadd.f32 %v1213_v33, %v1196_v38  ;;  %1351 = vmatprep.mubr.f32.mxu0 %v1220_v34 }
 0x4ea   :  { %1352 = vmatmul.mubr.f32.vlgmr.msra.gmra.mrb[6].mxu0 %v1219_v36  ;;  %v1221_v41 = vmax.f32 %v1217_v37, 0.0 }
 0x4eb   :  { %v1222_v40 = vmax.f32 %v1218_v39, 0.0 }
 0x4ed   :  { %1357 = vmatprep.mubr.f32.mxu0 %v1222_v40 }
 0x4ee   :  { %1358 = vmatmul.mubr.f32.gmra.mrb[8].mxu0 %v1221_v41 }
 0x4ef   :  { %1461 = vmatprep.mubr.f32.mxu0 %v2898_v60 }
 0x5bd   :  { %v3151_v42 = vpop.f32.mrb[6].mxu0 }
 0x5be   :  { %v3153_v43 = vpop.f32.mrb[7].mxu0 }
 0x5c1   :  { %v3155_v44 = vpop.f32.mrb[8].mxu0 }
 0x5c2   :  { %v3157_v45 = vpop.f32.mrb[9].mxu0  ;;  %v2796_v46 = vpack.i.bf16 %v3155_v44, %v3151_v42  ;;  %v2656_v49 = vpack.c.bf16 %v3155_v44, %v3151_v42  ;;  %v1727_v42 = vld [vmem:[%s3427_s1 + $0x110] sm:$0xff] }
 0x5c3   :  { %v2801_v47 = vpack.i.bf16 %v3157_v45, %v3153_v43  ;;  %v2654_v48 = vpack.c.bf16 %v3157_v45, %v3153_v43  ;;  %v1381_v43 = vld [vmem:[%s3427_s1 + $0xc8] sm:$0xff]  ;;  %v1382_v44 = vld [vmem:[%s3427_s1 + $0xd0] sm:$0xff] }
 0x5c4   :  { %2797 = vrot.lane.b32.xlu1 %v2796_v46, %s2897_s12 }
 0x5c5   :  { %2802 = vrot.lane.b32.xlu0 %v2801_v47, %s2897_s12  ;;  %s2902_s12 = smov 122  }
 0x5c8   :  { %2807 = vrot.lane.b32.xlu1 %v2796_v46, %s2899_s24 }
 0x5c9   :  { %2812 = vrot.lane.b32.xlu0 %v2801_v47, %s2899_s24 }
 0x5cc   :  { %2817 = vrot.lane.b32.xlu1 %v2796_v46, %s2900_s25 }
 0x5cd   :  { %2822 = vrot.lane.b32.xlu0 %v2801_v47, %s2900_s25 }
 0x5d0   :  { %2827 = vrot.lane.b32.xlu1 %v2796_v46, %s2901_s26 }
 0x5d1   :  { %2832 = vrot.lane.b32.xlu0 %v2801_v47, %s2901_s26 }
 0x5d4   :  { %2837 = vrot.lane.b32.xlu1 %v2796_v46, %s2896_s11 }
 0x5d5   :  { %2847 = vrot.lane.b32.xlu0 %v2801_v47, %s2896_s11 }
 0x5d8   :  { %2842 = vrot.lane.b32.xlu1 %v2796_v46, %s2902_s12 }
 0x5d9   :  { %2852 = vrot.lane.b32.xlu0 %v2801_v47, %s2902_s12 }
 0x5dc   :  { %2857 = vrot.lane.b32.xlu1 %v2796_v46, %s2903_s27 }
 0x5dd   :  { %2862 = vrot.lane.b32.xlu0 %v2801_v47, %s2903_s27 }
 0x5e0   :  { %2348 = vperm.xlu1 %2785, %v2342_v50  }
 0x5e1   :  { %2353 = vperm.xlu0 %2784, %v2343_v51   ;;  %v1602_v51 = vld [vmem:[%s3427_s1 + $0xf8] sm:$0xff] }
 0x5e4   :  { %2358 = vperm.xlu1 %2785, %v2344_v52  }
 0x5e5   :  { %2363 = vperm.xlu0 %2784, %v2345_v53  }
 0x5e8   :  { %2386 = vperm.xlu1 %2785, %v2383_v54  }
 0x636   :  { %v2798_v55 = vpop.permute.xlu1 %2797 }
 0x637   :  { %v2800_v56 = vunpack.i.h.bf16 %v2798_v55  ;;  %v2799_v57 = vunpack.i.l.bf16 %v2798_v55  ;;  %v2803_v58 = vpop.permute.xlu0 %2802 }
 0x638   :  { %v2805_v59 = vunpack.i.h.bf16 %v2803_v58  ;;  %v2804_v61 = vunpack.i.l.bf16 %v2803_v58 }
 0x63a   :  { %v1596_v62 = vsel %vm129_vm3, %v2800_v56, %v2805_v59  ;;  %v1595_v63 = vsel %vm129_vm3, %v2799_v57, %v2804_v61  ;;  %v2808_v0 = vpop.permute.xlu1 %2807  ;;  %v1597_v1 = vsel %vm129_vm3, %v2804_v61, %v2799_v57  ;;  %v1598_v4 = vsel %vm129_vm3, %v2805_v59, %v2800_v56  ;;  %v1725_v56 = vld [vmem:[%s3427_s1 + $0x100] sm:$0xff] }
 0x63b   :  { %v2660_v5 = vpack.c.bf16 %v1596_v62, %v1595_v63  ;;  %v2810_v6 = vunpack.i.h.bf16 %v2808_v0  ;;  %v2809_v8 = vunpack.i.l.bf16 %v2808_v0  ;;  %v2813_v9 = vpop.permute.xlu0 %2812  ;;  %v2658_v10 = vpack.c.bf16 %v1598_v4, %v1597_v1  ;;  %v1380_v57 = vld [vmem:[%s3427_s1 + $0xc0] sm:$0xff]  ;;  %v1726_v63 = vld [vmem:[%s3427_s1 + $0x108] sm:$0xff] }
 0x63c   :  { %v2815_v11 = vunpack.i.h.bf16 %v2813_v9  ;;  %v2814_v2 = vunpack.i.l.bf16 %v2813_v9 }
 0x63d   :  { %2659 = vmatprep.subr.bf16.mxu1 %v2658_v10  ;;  %v1851_v10 = vld [vmem:[%s3427_s1 + $0x120] sm:$0xff] }
 0x63e   :  { %v1722_v3 = vsel %vm1720_vm5, %v2810_v6, %v2815_v11  ;;  %v1721_v7 = vsel %vm1720_vm5, %v2809_v8, %v2814_v2  ;;  %v2818_v12 = vpop.permute.xlu1 %2817  ;;  %2661 = vmatpush1.bf16.msra.mxu1 %v2660_v5  ;;  %v1723_v14 = vsel %vm1720_vm5, %v2814_v2, %v2809_v8  ;;  %v1724_v15 = vsel %vm1720_vm5, %v2815_v11, %v2810_v6  ;;  %v1728_v5 = vld [vmem:[%s3427_s1 + $0x118] sm:$0xff] }
 0x63f   :  { %v2664_v16 = vpack.c.bf16 %v1722_v3, %v1721_v7  ;;  %v2820_v17 = vunpack.i.h.bf16 %v2818_v12  ;;  %v2819_v19 = vunpack.i.l.bf16 %v2818_v12  ;;  %v2823_v20 = vpop.permute.xlu0 %2822  ;;  %v2662_v21 = vpack.c.bf16 %v1724_v15, %v1723_v14  ;;  %v1383_v6 = vld [vmem:[%s3427_s1 + $0xd8] sm:$0xff]  ;;  %v1364_v3 = vld [vmem:[%s3427_s1 + $0xa0] sm:$0xff]  ;;  %v1365_v14 = vld [vmem:[%s3427_s1 + $0xa8] sm:$0xff] }
 0x640   :  { %v2825_v22 = vunpack.i.h.bf16 %v2823_v20  ;;  %v2824_v23 = vunpack.i.l.bf16 %v2823_v20  ;;  %v1853_v15 = vld [vmem:[%s3427_s1 + $0x130] sm:$0xff] }
 0x641   :  { %2497 = vmatmul.mubr.msk.f32.vlgmr.msra.gmra.mrb[2].mxu1 %vm1384_vm7, %v1599_v13  ;;  %2663 = vmatprep.subr.bf16.mxu1 %v2662_v21  ;;  %v1852_v13 = vld [vmem:[%s3427_s1 + $0x128] sm:$0xff] }
 0x642   :  { %v3208_v24 = vpop.permute.xlu1 %2827  ;;  %2665 = vmatpush1.bf16.msra.mxu1 %v2664_v16  ;;  %1685 = vmatprep.mubr.f32.mxu1 %v2898_v60  ;;  %v1849_v26 = vsel %vm1846_vm6, %v2824_v23, %v2819_v19  ;;  %v1850_v28 = vsel %vm1846_vm6, %v2825_v22, %v2820_v17  ;;  %v1848_v54 = vsel %vm1846_vm6, %v2820_v17, %v2825_v22  ;;  %v1366_v16 = vld [vmem:[%s3427_s1 + $0xb0] sm:$0xff] }
 0x643   :  { %v3216_v27 = vpop.permute.xlu0 %2832  ;;  %v2666_v29 = vpack.c.bf16 %v1850_v28, %v1849_v26  ;;  %v2830_v37 = vunpack.i.h.bf16 %v3208_v24  ;;  %v2829_v38 = vunpack.i.l.bf16 %v3208_v24  ;;  %v1847_v55 = vsel %vm1846_vm6, %v2819_v19, %v2824_v23  ;;  %v1854_v24 = vld [vmem:[%s3427_s1 + $0x138] sm:$0xff]  ;;  %v1977_v28 = vld [vmem:[%s3427_s1 + $0x140] sm:$0xff] }
 0x644   :  { %v2835_v39 = vunpack.i.h.bf16 %v3216_v27  ;;  %v2834_v40 = vunpack.i.l.bf16 %v3216_v27  ;;  %v2668_v61 = vpack.c.bf16 %v1848_v54, %v1847_v55 }
 0x645   :  { %2498 = vmatmul.mubr.msk.f32.gmra.mrb[4].mxu1 %vm1384_vm7, %v1600_v25  ;;  %2667 = vmatprep.subr.bf16.mxu1 %v2666_v29  ;;  %v1367_v25 = vld [vmem:[%s3427_s1 + $0xb8] sm:$0xff] }
 0x646   :  { %v2838_v30 = vpop.permute.xlu1 %2837  ;;  %1691 = vmatprep.mubr.f32.mxu1 %v2898_v60  ;;  %v1975_v58 = vsel %vm1972_vm8, %v2834_v40, %v2829_v38  ;;  %v1976_v59 = vsel %vm1972_vm8, %v2835_v39, %v2830_v37  ;;  %v1974_v8 = vsel %vm1972_vm8, %v2830_v37, %v2835_v39  ;;  %v1973_v9 = vsel %vm1972_vm8, %v2829_v38, %v2834_v40  ;;  %v2103_v38 = vld [vmem:[%s3427_s1 + $0x160] sm:$0xff]  ;;  %v2104_v40 = vld [vmem:[%s3427_s1 + $0x168] sm:$0xff] }
 0x647   :  { %v2840_v32 = vunpack.i.h.bf16 %v2838_v30  ;;  %v2839_v33 = vunpack.i.l.bf16 %v2838_v30  ;;  %v2848_v34 = vpop.permute.xlu0 %2847  ;;  %v2670_v62 = vpack.c.bf16 %v1976_v59, %v1975_v58  ;;  %v2672_v7 = vpack.c.bf16 %v1974_v8, %v1973_v9 }
 0x648   :  { %v2850_v35 = vunpack.i.h.bf16 %v2848_v34  ;;  %v2849_v36 = vunpack.i.l.bf16 %v2848_v34  ;;  %v1979_v34 = vld [vmem:[%s3427_s1 + $0x150] sm:$0xff] }
 0x649   :  { %2499 = vmatmul.mubr.msk.f32.gmra.mrb[6].mxu1 %vm1384_vm7, %v1601_v31 }
 0x64a   :  { %v1377_v41 = vsel %vm104_vm2, %v2840_v32, %v2850_v35  ;;  %v1376_v46 = vsel %vm104_vm2, %v2839_v33, %v2849_v36  ;;  %1697 = vmatprep.mubr.f32.mxu1 %v2898_v60  ;;  %v1378_v47 = vsel %vm104_vm2, %v2849_v36, %v2839_v33  ;;  %v1379_v50 = vsel %vm104_vm2, %v2850_v35, %v2840_v32  ;;  %v2843_v45 = vpop.permute.xlu1 %2842  ;;  %v1978_v33 = vld [vmem:[%s3427_s1 + $0x148] sm:$0xff]  ;;  %v1980_v35 = vld [vmem:[%s3427_s1 + $0x158] sm:$0xff] }
 0x64b   :  { %v2652_v52 = vpack.c.bf16 %v1377_v41, %v1376_v46  ;;  %v2650_v53 = vpack.c.bf16 %v1379_v50, %v1378_v47  ;;  %v2844_v0 = vunpack.i.l.bf16 %v2843_v45  ;;  %v2106_v41 = vld [vmem:[%s3427_s1 + $0x178] sm:$0xff]  ;;  %v2229_v46 = vld [vmem:[%s3427_s1 + $0x180] sm:$0xff]  ;;  %v2230_v47 = vld [vmem:[%s3427_s1 + $0x188] sm:$0xff] }
 0x64c   :  { %v2231_v50 = vld [vmem:[%s3427_s1 + $0x190] sm:$0xff] }
 0x64d   :  { %2651 = vmatprep.subr.bf16.mxu0 %v2650_v53  ;;  %2500 = vmatmul.mubr.msk.f32.gmra.mrb[8].mxu1 %vm1384_vm7, %v1602_v51  ;;  %v2232_v51 = vld [vmem:[%s3427_s1 + $0x198] sm:$0xff] }
 0x64e   :  { %2653 = vmatpush1.bf16.msra.mxu0 %v2652_v52  ;;  %1805 = vmatprep.mubr.f32.mxu1 %v2898_v60  ;;  %v2858_v17 = vpop.permute.xlu1 %2857 }
 0x64f   :  { %2655 = vmatprep.subr.bf16.mxu0 %v2654_v48  ;;  %v2853_v48 = vpop.permute.xlu0 %2852  ;;  %v2860_v20 = vunpack.i.h.bf16 %v2858_v17  ;;  %v2859_v21 = vunpack.i.l.bf16 %v2858_v17 }
 0x650   :  { %v2855_v1 = vunpack.i.h.bf16 %v2853_v48  ;;  %v2854_v4 = vunpack.i.l.bf16 %v2853_v48 }
 0x651   :  { %2501 = vmatmul.mubr.msk.f32.vlgmr.msra.gmra.mrb[2].mxu1 %vm1384_vm7, %v1725_v56  ;;  %2489 = vmatmul.mubr.msk.f32.vlgmr.msra.gmra.mrb[10].mxu0 %vm1384_vm7, %v1380_v57 }
 0x652   :  { %2669 = vmatpush1.bf16.msra.mxu1 %v2668_v61  ;;  %2657 = vmatpush1.bf16.msra.mxu0 %v2656_v49  ;;  %v2845_v49 = vunpack.i.h.bf16 %v2843_v45  ;;  %v2101_v11 = vsel %vm2098_vm9, %v2854_v4, %v2844_v0  ;;  %v2099_v27 = vsel %vm2098_vm9, %v2844_v0, %v2854_v4 }
 0x653   :  { %2671 = vmatprep.subr.bf16.mxu1 %v2670_v62  ;;  %1811 = vmatprep.mubr.f32.mxu1 %v2898_v60  ;;  %v2863_v19 = vpop.permute.xlu0 %2862 }
 0x654   :  { %1467 = vmatprep.mubr.f32.mxu0 %v2898_v60  ;;  %v2102_v2 = vsel %vm2098_vm9, %v2855_v1, %v2845_v49  ;;  %v2865_v22 = vunpack.i.h.bf16 %v2863_v19  ;;  %v2864_v23 = vunpack.i.l.bf16 %v2863_v19  ;;  %v2100_v26 = vsel %vm2098_vm9, %v2845_v49, %v2855_v1 }
 0x655   :  { %2502 = vmatmul.mubr.msk.f32.gmra.mrb[4].mxu1 %vm1384_vm7, %v1726_v63  ;;  %2490 = vmatmul.mubr.msk.f32.gmra.mrb[12].mxu0 %vm1384_vm7, %v1381_v43  ;;  %v2674_v12 = vpack.c.bf16 %v2102_v2, %v2101_v11  ;;  %v2676_v31 = vpack.c.bf16 %v2100_v26, %v2099_v27 }
 0x656   :  { %1817 = vmatprep.mubr.f32.mxu1 %v2898_v60  ;;  %1473 = vmatprep.mubr.f32.mxu0 %v2898_v60  ;;  %v2227_v29 = vsel %vm2224_vm10, %v2864_v23, %v2859_v21  ;;  %v2228_v30 = vsel %vm2224_vm10, %v2865_v22, %v2860_v20  ;;  %v2226_v36 = vsel %vm2224_vm10, %v2860_v20, %v2865_v22 }
 0x657   :  { %v2678_v32 = vpack.c.bf16 %v2228_v30, %v2227_v29  ;;  %v2225_v37 = vsel %vm2224_vm10, %v2859_v21, %v2864_v23 }
 0x658   :  { %v2680_v39 = vpack.c.bf16 %v2226_v36, %v2225_v37 }
 0x659   :  { %2503 = vmatmul.mubr.msk.f32.gmra.mrb[6].mxu1 %vm1384_vm7, %v1727_v42  ;;  %2491 = vmatmul.mubr.msk.f32.gmra.mrb[14].mxu0 %vm1384_vm7, %v1382_v44 }
 0x65a   :  { %1823 = vmatprep.mubr.f32.mxu1 %v2898_v60  ;;  %1479 = vmatprep.mubr.f32.mxu0 %v2898_v60 }
 0x65d   :  { %2504 = vmatmul.mubr.msk.f32.gmra.mrb[8].mxu1 %vm1384_vm7, %v1728_v5  ;;  %2492 = vmatmul.mubr.msk.f32.gmra.mrb[16].mxu0 %vm1384_vm7, %v1383_v6 }
 0x65e   :  { %1931 = vmatprep.mubr.f32.mxu1 %v2898_v60  ;;  %1562 = vmatprep.mubr.f32.mxu0 %v2898_v60 }
 0x65f   :  { %v2349_v42 = vpop.permute.xlu1 %2348 }
 0x660   :  { %v2354_v49 = vpop.permute.xlu0 %2353 }
 0x661   :  { %2505 = vmatmul.mubr.msk.f32.vlgmr.msra.gmra.mrb[2].mxu1 %vm1384_vm7, %v1851_v10  ;;  %2493 = vmatmul.mubr.msk.f32.vlgmr.msra.gmra.mrb[10].mxu0 %vm1384_vm7, %v1364_v3 }
 0x662   :  { %2673 = vmatpush1.bf16.msra.mxu1 %v2672_v7  ;;  %1937 = vmatprep.mubr.f32.mxu1 %v2898_v60 }
 0x663   :  { %2675 = vmatprep.subr.bf16.mxu1 %v2674_v12  ;;  %1568 = vmatprep.mubr.f32.mxu0 %v2898_v60 }
 0x664   :  { %v2364_v20 = vpop.permute.xlu0 %2363 }
 0x665   :  { %2506 = vmatmul.mubr.msk.f32.gmra.mrb[4].mxu1 %vm1384_vm7, %v1852_v13  ;;  %2494 = vmatmul.mubr.msk.f32.gmra.mrb[12].mxu0 %vm1384_vm7, %v1365_v14  ;;  %v2359_v13 = vpop.permute.xlu1 %2358 }
 0x666   :  { %1943 = vmatprep.mubr.f32.mxu1 %v2898_v60  ;;  %1574 = vmatprep.mubr.f32.mxu0 %v2898_v60 }
 0x669   :  { %2507 = vmatmul.mubr.msk.f32.gmra.mrb[6].mxu1 %vm1384_vm7, %v1853_v15  ;;  %2495 = vmatmul.mubr.msk.f32.gmra.mrb[14].mxu0 %vm1384_vm7, %v1366_v16 }
 0x66a   :  { %1949 = vmatprep.mubr.f32.mxu1 %v2898_v60  ;;  %1580 = vmatprep.mubr.f32.mxu0 %v2898_v60 }
 0x66d   :  { %2508 = vmatmul.mubr.msk.f32.gmra.mrb[8].mxu1 %vm1384_vm7, %v1854_v24  ;;  %2496 = vmatmul.mubr.msk.f32.gmra.mrb[16].mxu0 %vm1384_vm7, %v1367_v25 }
 0x66e   :  { %2057 = vmatprep.mubr.f32.mxu1 %v2898_v60  ;;  %2457 = vmatprep.mubr.f32.mxu0 %v2898_v60 }
 0x671   :  { %2509 = vmatmul.mubr.msk.f32.vlgmr.msra.gmra.mrb[2].mxu1 %vm1384_vm7, %v1977_v28 }
 0x672   :  { %2677 = vmatpush1.bf16.msra.mxu1 %v2676_v31  ;;  %2063 = vmatprep.mubr.f32.mxu1 %v2898_v60  ;;  %v2382_v31 = vld [vmem:[%s3427_s1 + $0x1a0] sm:$0xf] }
 0x673   :  { %2679 = vmatprep.subr.bf16.mxu1 %v2678_v32  ;;  %v2387_v32 = vpop.permute.xlu1 %2386 }
 0x675   :  { %2510 = vmatmul.mubr.msk.f32.gmra.mrb[4].mxu1 %vm1384_vm7, %v1978_v33 }
 0x676   :  { %2069 = vmatprep.mubr.f32.mxu1 %v2898_v60 }
 0x679   :  { %2511 = vmatmul.mubr.msk.f32.gmra.mrb[6].mxu1 %vm1384_vm7, %v1979_v34 }
 0x67a   :  { %2075 = vmatprep.mubr.f32.mxu1 %v2898_v60 }
 0x67d   :  { %2512 = vmatmul.mubr.msk.f32.gmra.mrb[8].mxu1 %vm1384_vm7, %v1980_v35 }
 0x67e   :  { %2183 = vmatprep.mubr.f32.mxu1 %v2898_v60 }
 0x681   :  { %2513 = vmatmul.mubr.msk.f32.vlgmr.msra.gmra.mrb[2].mxu1 %vm1384_vm7, %v2103_v38 }
 0x682   :  { %2681 = vmatpush1.bf16.msra.mxu1 %v2680_v39  ;;  %2189 = vmatprep.mubr.f32.mxu1 %v2898_v60 }
 0x685   :  { %2514 = vmatmul.mubr.msk.f32.gmra.mrb[4].mxu1 %vm1384_vm7, %v2104_v40 }
 0x686   :  { %2195 = vmatprep.mubr.f32.mxu1 %v2898_v60 }
 0x689   :  { %2515 = vmatmul.mubr.msk.f32.gmra.mrb[6].mxu1 %vm1384_vm7, %v2105_v18 }
 0x68a   :  { %2201 = vmatprep.mubr.f32.mxu1 %v2898_v60 }
 0x68d   :  { %2516 = vmatmul.mubr.msk.f32.gmra.mrb[8].mxu1 %vm1384_vm7, %v2106_v41 }
 0x68e   :  { %2309 = vmatprep.mubr.f32.mxu1 %v2898_v60 }
 0x691   :  { %2517 = vmatmul.mubr.msk.f32.vlgmr.msra.gmra.mrb[2].mxu1 %vm1384_vm7, %v2229_v46 }
 0x692   :  { %2315 = vmatprep.mubr.f32.mxu1 %v2898_v60 }
 0x695   :  { %2518 = vmatmul.mubr.msk.f32.gmra.mrb[4].mxu1 %vm1384_vm7, %v2230_v47 }
 0x696   :  { %2321 = vmatprep.mubr.f32.mxu1 %v2898_v60 }
 0x699   :  { %2519 = vmatmul.mubr.msk.f32.gmra.mrb[6].mxu1 %vm1384_vm7, %v2231_v50 }
 0x69a   :  { %2327 = vmatprep.mubr.f32.mxu1 %v2898_v60 }
 0x69d   :  { %2520 = vmatmul.mubr.msk.f32.gmra.mrb[8].mxu1 %vm1384_vm7, %v2232_v51 }
 0x734   :  { %v1564_v52 = vpop.f32.mrb[10].mxu0 }
 0x735   :  { %v1566_v53 = vpop.f32.mrb[11].mxu0 }
 0x738   :  { %v1570_v54 = vpop.f32.mrb[12].mxu0 }
 0x739   :  { %v1572_v55 = vpop.f32.mrb[13].mxu0 }
 0x73c   :  { %v1576_v56 = vpop.f32.mrb[14].mxu0 }
 0x73d   :  { %v1578_v57 = vpop.f32.mrb[15].mxu0 }
 0x740   :  { %v1582_v58 = vpop.f32.mrb[16].mxu0 }
 0x741   :  { %v1584_v59 = vpop.f32.mrb[17].mxu0 }
 0x764   :  { %v2311_v61 = vpop.f32.mrb[2].mxu1 }
 0x765   :  { %v2690_v62 = vadd.f32 %v2311_v61, %v1564_v52  ;;  %v2313_v63 = vpop.f32.mrb[3].mxu1 }
 0x766   :  { %v2691_v43 = vadd.f32 %v2313_v63, %v1566_v53 }
 0x767   :  { %v2366_v44 = vadd.f32 %v2690_v62, %v2349_v42 }
 0x768   :  { %v2317_v60 = vpop.f32.mrb[4].mxu1  ;;  %v2367_v0 = vadd.f32 %v2691_v43, %v2349_v42 }
 0x769   :  { %v2692_v45 = vadd.f32 %v2317_v60, %v1570_v54  ;;  %v2319_v48 = vpop.f32.mrb[5].mxu1  ;;  %v2374_v8 = vmax.f32 %v2366_v44, 0.0 }
 0x76a   :  { %v2693_v1 = vadd.f32 %v2319_v48, %v1572_v55  ;;  %v2375_v2 = vmax.f32 %v2367_v0, 0.0 }
 0x76b   :  { %v2368_v4 = vadd.f32 %v2692_v45, %v2354_v49 }
 0x76c   :  { %v2369_v5 = vadd.f32 %v2693_v1, %v2354_v49  ;;  %v2323_v6 = vpop.f32.mrb[6].mxu1 }
 0x76d   :  { %v2376_v9 = vmax.f32 %v2368_v4, 0.0  ;;  %v2694_v10 = vadd.f32 %v2323_v6, %v1576_v56  ;;  %v2325_v11 = vpop.f32.mrb[7].mxu1 }
 0x76e   :  { %v2377_v3 = vmax.f32 %v2369_v5, 0.0  ;;  %v2695_v7 = vadd.f32 %v2325_v11, %v1578_v57 }
 0x76f   :  { %v2684_v12 = vpack.c.bf16 %v2376_v9, %v2374_v8  ;;  %v2370_v16 = vadd.f32 %v2694_v10, %v2359_v13 }
 0x770   :  { %v2329_v14 = vpop.f32.mrb[8].mxu1  ;;  %v2682_v15 = vpack.c.bf16 %v2377_v3, %v2375_v2  ;;  %v2371_v21 = vadd.f32 %v2695_v7, %v2359_v13 }
 0x771   :  { %v2696_v17 = vadd.f32 %v2329_v14, %v1582_v58  ;;  %v2331_v19 = vpop.f32.mrb[9].mxu1  ;;  %v2378_v25 = vmax.f32 %v2370_v16, 0.0 }
 0x772   :  { %v2697_v22 = vadd.f32 %v2331_v19, %v1584_v59  ;;  %2683 = vmatprep.subr.bf16.mxu0 %v2682_v15  ;;  %v2379_v27 = vmax.f32 %v2371_v21, 0.0 }
 0x773   :  { %v2372_v23 = vadd.f32 %v2696_v17, %v2364_v20  ;;  %2685 = vmatpush1.bf16.msra.mxu0 %v2684_v12 }
 0x774   :  { %v2373_v24 = vadd.f32 %v2697_v22, %v2364_v20 }
 0x775   :  { %v2380_v26 = vmax.f32 %v2372_v23, 0.0 }
 0x776   :  { %v2381_v28 = vmax.f32 %v2373_v24, 0.0 }
 0x777   :  { %v2688_v29 = vpack.c.bf16 %v2380_v26, %v2378_v25 }
 0x778   :  { %v2686_v30 = vpack.c.bf16 %v2381_v28, %v2379_v27 }
 0x77a   :  { %2687 = vmatprep.subr.bf16.mxu0 %v2686_v30 }
 0x77b   :  { %2689 = vmatpush1.bf16.msra.mxu0 %v2688_v29 }
 0x77e   :  { %2521 = vmatmul.mubr.msk.f32.vlgmr.msra.gmra.mrb[18].mxu0 %vm2389_vm11, %v2382_v31 }
 0x851   :  { %v2459_v33 = vpop.f32.mrb[18].mxu0 }
 0x852   :  { %v2460_v34 = vadd.f32 %v2459_v33, %v2387_v32  ;;  %v2461_v35 = vpop.f32.mrb[19].mxu0 }
 0x853   :  { %v2462_v36 = vadd.f32 %v2461_v35, %v2387_v32 }
 0x855   :  { %v2466_v37 = vcombine.low %v2460_v34, %v2462_v36 }
 0x857   :  { %2468 = vst [vmem:[%s3429_s3] sm:$0xff] %v2466_v37 }
 0x858   :  { %2473 = vsyncpa [#allocation3], 1 }

</bundles_post_ra>
